<compile_context>
chip_gen: v7x
topology: tpu7x:2x2x1
jax: 0.10.0
libtpu: 0.0.40
codegen_flags: <defaults>
</compile_context>

<pallas_src>
import jax
import jax.numpy as jnp
import numpy as np
from jax.experimental import pallas as pl
from jax.experimental.pallas import tpu as pltpu

KSIZE = 7
PAD = KSIZE // 2          # 3
PAD_ROWS = PAD + 1        # 4 guard rows top & bottom -> every tap offset >= 0


def _tree_sum(vals):
    vals = list(vals)
    while len(vals) > 1:
        nxt = [vals[i] + vals[i + 1] for i in range(0, len(vals) - 1, 2)]
        if len(vals) % 2:
            nxt.append(vals[-1])
        vals = nxt
    return vals[0]


def _make_kernel(C, H, W, U):
    HW = H * W
    ORIGIN = PAD_ROWS * W                  # flat offset of the interior
    LVP = (H + 2 * PAD_ROWS) * W           # flat length of one padded plane
    n_slabs = C // U
    rem = C - n_slabs * U

    def kernel(w_ref, col_ref, x_ref, o_ref, vp_ref):
        # w_ref:   (2*7*7,) f32 SMEM   flattened conv weight (bias-free)
        # col_ref: (1, HW)  i32 VMEM   column index (q mod W), built on host
        # x_ref:   (C, HW)  VMEM       one image, lane-dense
        # o_ref:   (C, HW)  VMEM
        # vp_ref:  (2, LVP) f32 VMEM   vertically zero-padded avg / max planes

        # ---- channel mean / max (torch.mean / torch.max over dim=1) --------
        seed = x_ref[pl.ds(0, U), :]                          # (U, HW)
        acc_s = seed.astype(jnp.float32)
        acc_m = seed                                          # max exact in x dtype

        if n_slabs > 1:
            def reduce_slab(i, carry):
                s, m = carry
                base = pl.multiple_of(i * U, U)
                slab = x_ref[pl.ds(base, U), :]
                return s + slab.astype(jnp.float32), jnp.maximum(m, slab)

            acc_s, acc_m = jax.lax.fori_loop(1, n_slabs, reduce_slab,
                                             (acc_s, acc_m))

        ssum = jnp.sum(acc_s, axis=0, keepdims=True)                     # (1, HW)
        smax = jnp.max(acc_m, axis=0, keepdims=True).astype(jnp.float32)
        for c in range(C - rem, C):                                      # tail chans
            row = x_ref[pl.ds(c, 1), :].astype(jnp.float32)
            ssum = ssum + row
            smax = jnp.maximum(smax, row)
        avg = ssum * (1.0 / C)

        # ---- fill the padded conv scratch (zero borders + interior) --------
        zeros_border = jnp.zeros((1, ORIGIN), jnp.float32)
        for p, plane in ((0, avg), (1, smax)):
            vp_ref[pl.ds(p, 1), pl.ds(0, ORIGIN)] = zeros_border
            vp_ref[pl.ds(p, 1), pl.ds(ORIGIN + HW, ORIGIN)] = zeros_border
            vp_ref[pl.ds(p, 1), pl.ds(ORIGIN, HW)] = plane

        # ---- 7x7 "same" conv, fully lane-dense ------------------------------
        wgt = [[[w_ref[(p * KSIZE + kh) * KSIZE + kw] for kw in range(KSIZE)]
                for kh in range(KSIZE)] for p in range(2)]   # hoisted SMEM reads
        col = col_ref[...]                                   # (1, HW) int32

        groups = []
        for kw in range(KSIZE):
            dkw = kw - PAD
            terms = []
            for p in range(2):
                for kh in range(KSIZE):
                    start = ORIGIN + (kh - PAD) * W + dkw
                    tap = vp_ref[pl.ds(p, 1), pl.ds(start, HW)]       # (1, HW)
                    terms.append(wgt[p][kh][kw] * tap)
            group = _tree_sum(terms)
            if dkw != 0:
                # zero taps whose true source column falls outside [0, W)
                valid = (col >= -dkw) & (col < W - dkw)
                group = jnp.where(valid, group, 0.0)
            groups.append(group)
        acc = _tree_sum(groups)                                       # (1, HW) f32

        # sigmoid: EUP exp + exact reciprocal (matches the reference closely).
        gate = pl.reciprocal(1.0 + jnp.exp(-acc), approx=False)
        gate = gate.astype(x_ref.dtype)
        # TODO(synk): on v5e (no bf16 VALU) keep the bf16 rescale math in f32.

        # ---- rescale: o = x * gate, U channels per step ---------------------
        gate_b = jnp.broadcast_to(gate, (U, HW))       # hoisted single broadcast

        if n_slabs > 1:
            def scale_slab(i, carry):
                base = pl.multiple_of(i * U, U)
                o_ref[pl.ds(base, U), :] = (
                    x_ref[pl.ds(base, U), :] * gate_b).astype(o_ref.dtype)
                return carry

            jax.lax.fori_loop(0, n_slabs, scale_slab, 0)
        else:
            o_ref[pl.ds(0, U), :] = (
                x_ref[pl.ds(0, U), :] * gate_b).astype(o_ref.dtype)
        for c in range(C - rem, C):
            o_ref[pl.ds(c, 1), :] = (
                x_ref[pl.ds(c, 1), :] * gate).astype(o_ref.dtype)

    return kernel, LVP


def spatial_attention(x, conv_weight):
    """x: (N, C, H, W); conv_weight: (1, 2, 7, 7) (Conv2d(2, 1, 7, bias=False))."""
    N, C, H, W = x.shape
    assert conv_weight.shape == (1, 2, KSIZE, KSIZE)
    assert W >= PAD, "flat-shift conv path needs W >= 3"
    HW = H * W

    # Channel-unroll factor: several channels per step to fill the VALU, capped
    # so the (U, HW) f32 reduction accumulator stays within ~16 vregs.
    u_cap = max(1, (16 * 1024) // max(HW, 1))
    unroll = max(1, min(8, C, u_cap))

    kernel, lvp = _make_kernel(C, H, W, unroll)

    w_flat = conv_weight.reshape(-1).astype(jnp.float32)               # (98,)
    col_ids = jnp.tile(jnp.arange(W, dtype=jnp.int32), H).reshape(1, HW)
    x_flat = x.reshape(N, C, HW)                                       # free reshape

    # VMEM budget: double-buffered in/out blocks + scratch + slack, clamped to
    # ~75% of physical VMEM (~48 MiB on v7x, ~96 MiB on v5e/v6e).
    block_bytes = C * HW * x.dtype.itemsize
    scratch_bytes = 2 * lvp * 4 + HW * 4
    need = 4 * block_bytes + scratch_bytes + (4 << 20)
    try:
        cap = int(getattr(pltpu.get_tpu_info(), "vmem_capacity_bytes", 64 << 20))
    except Exception:
        cap = 64 << 20
    vmem_limit = int(min(max(need, 16 << 20), (cap * 3) // 4))

    out_flat = pl.pallas_call(
        kernel,
        out_shape=jax.ShapeDtypeStruct((N, C, HW), x.dtype),
        grid=(N,),
        in_specs=[
            pl.BlockSpec(memory_space=pltpu.MemorySpace.SMEM),          # weights
            pl.BlockSpec((1, HW), lambda n: (0, 0)),                    # col ids
            pl.BlockSpec((None, C, HW), lambda n: (n, 0, 0)),           # x
        ],
        out_specs=pl.BlockSpec((None, C, HW), lambda n: (n, 0, 0)),
        scratch_shapes=[pltpu.VMEM((2, lvp), jnp.float32)],
        compiler_params=pltpu.CompilerParams(
            dimension_semantics=("parallel",),
            vmem_limit_bytes=vmem_limit),
    )(w_flat, col_ids, x_flat)
    return out_flat.reshape(N, C, H, W)


def spatial_attention_reference(x, conv_weight):
    avg = jnp.mean(x, axis=1, keepdims=True)
    mx = jnp.max(x, axis=1, keepdims=True)
    feat = jnp.concatenate([avg, mx], axis=1)                          # (N, 2, H, W)
    conv = jax.lax.conv_general_dilated(
        feat, conv_weight,
        window_strides=(1, 1),
        padding=((PAD, PAD), (PAD, PAD)),
        dimension_numbers=("NCHW", "OIHW", "NCHW"))
    return x * jax.nn.sigmoid(conv)


if __name__ == "__main__":
    key = jax.random.PRNGKey(0)
    kx, kw, kx2, kw2 = jax.random.split(key, 4)

    # Primary check (small shapes implied by the module).
    N, C, H, W = 2, 4, 16, 16
    x = jax.random.normal(kx, (N, C, H, W), dtype=jnp.float32)
    conv_weight = 0.1 * jax.random.normal(kw, (1, 2, KSIZE, KSIZE), dtype=jnp.float32)

    out = jax.block_until_ready(spatial_attention(x, conv_weight))
    ref = jax.block_until_ready(spatial_attention_reference(x, conv_weight))
    np.testing.assert_allclose(np.asarray(out), np.asarray(ref), rtol=1e-5, atol=1e-5)

    # Secondary check: exercises the channel-slab fori_loop + remainder path and
    # a non-power-of-two width.
    N2, C2, H2, W2 = 1, 20, 8, 20
    x2 = jax.random.normal(kx2, (N2, C2, H2, W2), dtype=jnp.float32)
    conv_weight2 = 0.1 * jax.random.normal(kw2, (1, 2, KSIZE, KSIZE), dtype=jnp.float32)
    out2 = jax.block_until_ready(spatial_attention(x2, conv_weight2))
    ref2 = jax.block_until_ready(spatial_attention_reference(x2, conv_weight2))
    np.testing.assert_allclose(np.asarray(out2), np.asarray(ref2), rtol=1e-5, atol=1e-5)

    print("KERNEL_OK")
</pallas_src>

<mosaic_0001>
module attributes {stable_mosaic.version = 11 : i64} {
  func.func @kernel(%arg0: i32, %arg1: memref<98xf32, #tpu.memory_space<smem>>, %arg2: memref<1x256xi32, #tpu.memory_space<vmem>>, %arg3: memref<1x4x256xf32, #tpu.memory_space<vmem>>, %arg4: memref<1x4x256xf32, #tpu.memory_space<vmem>>, %arg5: memref<2x384xf32, #tpu.memory_space<vmem>>) attributes {dimension_semantics = [#tpu.dimension_semantics<parallel>], iteration_bounds = array<i64: 2>, scalar_prefetch = 0 : i64, scratch_operands = 1 : i64, tpu.core_type = #tpu.core_type<tc>, window_params = [{transform_indices = @transform_0, window_bounds = array<i64: 98>}, {pipeline_mode = #tpu.pipeline_mode<synchronous>, transform_indices = @transform_1, window_bounds = array<i64: 1, 256>}, {transform_indices = @transform_2, window_bounds = array<i64: 1, 4, 256>}, {transform_indices = @transform_3, window_bounds = array<i64: 1, 4, 256>}]} {
    %c0 = arith.constant 0 : index
    %c0_0 = arith.constant 0 : index
    %c0_1 = arith.constant 0 : index
    %0 = vector.load %arg3[%c0, %c0_0, %c0_1] : memref<1x4x256xf32, #tpu.memory_space<vmem>>, vector<1x4x256xf32>
    %1 = vector.shape_cast %0 : vector<1x4x256xf32> to vector<4x256xf32>
    %cst = arith.constant dense<0.000000e+00> : vector<256xf32>
    %2 = vector.multi_reduction <add>, %1, %cst [0] : vector<4x256xf32> to vector<256xf32>
    %3 = vector.shape_cast %2 : vector<256xf32> to vector<1x256xf32>
    %cst_2 = arith.constant dense<0xFF800000> : vector<256xf32>
    %4 = vector.multi_reduction <maximumf>, %1, %cst_2 [0] : vector<4x256xf32> to vector<256xf32>
    %5 = vector.shape_cast %4 : vector<256xf32> to vector<1x256xf32>
    %cst_3 = arith.constant 2.500000e-01 : f32
    %6 = vector.broadcast %cst_3 : f32 to vector<1x256xf32>
    %7 = arith.mulf %3, %6 : vector<1x256xf32>
    %cst_4 = arith.constant 0.000000e+00 : f32
    %8 = vector.broadcast %cst_4 : f32 to vector<1x64xf32>
    %c0_5 = arith.constant 0 : index
    %c0_6 = arith.constant 0 : index
    %9 = vector.load %arg5[%c0_5, %c0_6] : memref<2x384xf32, #tpu.memory_space<vmem>>, vector<1x64xf32>
    tpu.vector_store %arg5[%c0_5, %c0_6], %8 {strides = array<i32>} : memref<2x384xf32, #tpu.memory_space<vmem>>, vector<1x64xf32>,
    %c0_7 = arith.constant 0 : index
    %c320 = arith.constant 320 : index
    %10 = vector.load %arg5[%c0_7, %c320] : memref<2x384xf32, #tpu.memory_space<vmem>>, vector<1x64xf32>
    tpu.vector_store %arg5[%c0_7, %c320], %8 {strides = array<i32>} : memref<2x384xf32, #tpu.memory_space<vmem>>, vector<1x64xf32>,
    %c0_8 = arith.constant 0 : index
    %c64 = arith.constant 64 : index
    %11 = vector.load %arg5[%c0_8, %c64] : memref<2x384xf32, #tpu.memory_space<vmem>>, vector<1x256xf32>
    tpu.vector_store %arg5[%c0_8, %c64], %7 {strides = array<i32>} : memref<2x384xf32, #tpu.memory_space<vmem>>, vector<1x256xf32>,
    %c1 = arith.constant 1 : index
    %c0_9 = arith.constant 0 : index
    %12 = vector.load %arg5[%c1, %c0_9] : memref<2x384xf32, #tpu.memory_space<vmem>>, vector<1x64xf32>
    tpu.vector_store %arg5[%c1, %c0_9], %8 {strides = array<i32>} : memref<2x384xf32, #tpu.memory_space<vmem>>, vector<1x64xf32>,
    %c1_10 = arith.constant 1 : index
    %c320_11 = arith.constant 320 : index
    %13 = vector.load %arg5[%c1_10, %c320_11] : memref<2x384xf32, #tpu.memory_space<vmem>>, vector<1x64xf32>
    tpu.vector_store %arg5[%c1_10, %c320_11], %8 {strides = array<i32>} : memref<2x384xf32, #tpu.memory_space<vmem>>, vector<1x64xf32>,
    %c1_12 = arith.constant 1 : index
    %c64_13 = arith.constant 64 : index
    %14 = vector.load %arg5[%c1_12, %c64_13] : memref<2x384xf32, #tpu.memory_space<vmem>>, vector<1x256xf32>
    tpu.vector_store %arg5[%c1_12, %c64_13], %5 {strides = array<i32>} : memref<2x384xf32, #tpu.memory_space<vmem>>, vector<1x256xf32>,
    %c0_14 = arith.constant 0 : index
    %15 = memref.load %arg1[%c0_14] : memref<98xf32, #tpu.memory_space<smem>>
    %c1_15 = arith.constant 1 : index
    %16 = memref.load %arg1[%c1_15] : memref<98xf32, #tpu.memory_space<smem>>
    %c2 = arith.constant 2 : index
    %17 = memref.load %arg1[%c2] : memref<98xf32, #tpu.memory_space<smem>>
    %c3 = arith.constant 3 : index
    %18 = memref.load %arg1[%c3] : memref<98xf32, #tpu.memory_space<smem>>
    %c4 = arith.constant 4 : index
    %19 = memref.load %arg1[%c4] : memref<98xf32, #tpu.memory_space<smem>>
    %c5 = arith.constant 5 : index
    %20 = memref.load %arg1[%c5] : memref<98xf32, #tpu.memory_space<smem>>
    %c6 = arith.constant 6 : index
    %21 = memref.load %arg1[%c6] : memref<98xf32, #tpu.memory_space<smem>>
    %c7 = arith.constant 7 : index
    %22 = memref.load %arg1[%c7] : memref<98xf32, #tpu.memory_space<smem>>
    %c8 = arith.constant 8 : index
    %23 = memref.load %arg1[%c8] : memref<98xf32, #tpu.memory_space<smem>>
    %c9 = arith.constant 9 : index
    %24 = memref.load %arg1[%c9] : memref<98xf32, #tpu.memory_space<smem>>
    %c10 = arith.constant 10 : index
    %25 = memref.load %arg1[%c10] : memref<98xf32, #tpu.memory_space<smem>>
    %c11 = arith.constant 11 : index
    %26 = memref.load %arg1[%c11] : memref<98xf32, #tpu.memory_space<smem>>
    %c12 = arith.constant 12 : index
    %27 = memref.load %arg1[%c12] : memref<98xf32, #tpu.memory_space<smem>>
    %c13 = arith.constant 13 : index
    %28 = memref.load %arg1[%c13] : memref<98xf32, #tpu.memory_space<smem>>
    %c14 = arith.constant 14 : index
    %29 = memref.load %arg1[%c14] : memref<98xf32, #tpu.memory_space<smem>>
    %c15 = arith.constant 15 : index
    %30 = memref.load %arg1[%c15] : memref<98xf32, #tpu.memory_space<smem>>
    %c16 = arith.constant 16 : index
    %31 = memref.load %arg1[%c16] : memref<98xf32, #tpu.memory_space<smem>>
    %c17 = arith.constant 17 : index
    %32 = memref.load %arg1[%c17] : memref<98xf32, #tpu.memory_space<smem>>
    %c18 = arith.constant 18 : index
    %33 = memref.load %arg1[%c18] : memref<98xf32, #tpu.memory_space<smem>>
    %c19 = arith.constant 19 : index
    %34 = memref.load %arg1[%c19] : memref<98xf32, #tpu.memory_space<smem>>
    %c20 = arith.constant 20 : index
    %35 = memref.load %arg1[%c20] : memref<98xf32, #tpu.memory_space<smem>>
    %c21 = arith.constant 21 : index
    %36 = memref.load %arg1[%c21] : memref<98xf32, #tpu.memory_space<smem>>
    %c22 = arith.constant 22 : index
    %37 = memref.load %arg1[%c22] : memref<98xf32, #tpu.memory_space<smem>>
    %c23 = arith.constant 23 : index
    %38 = memref.load %arg1[%c23] : memref<98xf32, #tpu.memory_space<smem>>
    %c24 = arith.constant 24 : index
    %39 = memref.load %arg1[%c24] : memref<98xf32, #tpu.memory_space<smem>>
    %c25 = arith.constant 25 : index
    %40 = memref.load %arg1[%c25] : memref<98xf32, #tpu.memory_space<smem>>
    %c26 = arith.constant 26 : index
    %41 = memref.load %arg1[%c26] : memref<98xf32, #tpu.memory_space<smem>>
    %c27 = arith.constant 27 : index
    %42 = memref.load %arg1[%c27] : memref<98xf32, #tpu.memory_space<smem>>
    %c28 = arith.constant 28 : index
    %43 = memref.load %arg1[%c28] : memref<98xf32, #tpu.memory_space<smem>>
    %c29 = arith.constant 29 : index
    %44 = memref.load %arg1[%c29] : memref<98xf32, #tpu.memory_space<smem>>
    %c30 = arith.constant 30 : index
    %45 = memref.load %arg1[%c30] : memref<98xf32, #tpu.memory_space<smem>>
    %c31 = arith.constant 31 : index
    %46 = memref.load %arg1[%c31] : memref<98xf32, #tpu.memory_space<smem>>
    %c32 = arith.constant 32 : index
    %47 = memref.load %arg1[%c32] : memref<98xf32, #tpu.memory_space<smem>>
    %c33 = arith.constant 33 : index
    %48 = memref.load %arg1[%c33] : memref<98xf32, #tpu.memory_space<smem>>
    %c34 = arith.constant 34 : index
    %49 = memref.load %arg1[%c34] : memref<98xf32, #tpu.memory_space<smem>>
    %c35 = arith.constant 35 : index
    %50 = memref.load %arg1[%c35] : memref<98xf32, #tpu.memory_space<smem>>
    %c36 = arith.constant 36 : index
    %51 = memref.load %arg1[%c36] : memref<98xf32, #tpu.memory_space<smem>>
    %c37 = arith.constant 37 : index
    %52 = memref.load %arg1[%c37] : memref<98xf32, #tpu.memory_space<smem>>
    %c38 = arith.constant 38 : index
    %53 = memref.load %arg1[%c38] : memref<98xf32, #tpu.memory_space<smem>>
    %c39 = arith.constant 39 : index
    %54 = memref.load %arg1[%c39] : memref<98xf32, #tpu.memory_space<smem>>
    %c40 = arith.constant 40 : index
    %55 = memref.load %arg1[%c40] : memref<98xf32, #tpu.memory_space<smem>>
    %c41 = arith.constant 41 : index
    %56 = memref.load %arg1[%c41] : memref<98xf32, #tpu.memory_space<smem>>
    %c42 = arith.constant 42 : index
    %57 = memref.load %arg1[%c42] : memref<98xf32, #tpu.memory_space<smem>>
    %c43 = arith.constant 43 : index
    %58 = memref.load %arg1[%c43] : memref<98xf32, #tpu.memory_space<smem>>
    %c44 = arith.constant 44 : index
    %59 = memref.load %arg1[%c44] : memref<98xf32, #tpu.memory_space<smem>>
    %c45 = arith.constant 45 : index
    %60 = memref.load %arg1[%c45] : memref<98xf32, #tpu.memory_space<smem>>
    %c46 = arith.constant 46 : index
    %61 = memref.load %arg1[%c46] : memref<98xf32, #tpu.memory_space<smem>>
    %c47 = arith.constant 47 : index
    %62 = memref.load %arg1[%c47] : memref<98xf32, #tpu.memory_space<smem>>
    %c48 = arith.constant 48 : index
    %63 = memref.load %arg1[%c48] : memref<98xf32, #tpu.memory_space<smem>>
    %c49 = arith.constant 49 : index
    %64 = memref.load %arg1[%c49] : memref<98xf32, #tpu.memory_space<smem>>
    %c50 = arith.constant 50 : index
    %65 = memref.load %arg1[%c50] : memref<98xf32, #tpu.memory_space<smem>>
    %c51 = arith.constant 51 : index
    %66 = memref.load %arg1[%c51] : memref<98xf32, #tpu.memory_space<smem>>
    %c52 = arith.constant 52 : index
    %67 = memref.load %arg1[%c52] : memref<98xf32, #tpu.memory_space<smem>>
    %c53 = arith.constant 53 : index
    %68 = memref.load %arg1[%c53] : memref<98xf32, #tpu.memory_space<smem>>
    %c54 = arith.constant 54 : index
    %69 = memref.load %arg1[%c54] : memref<98xf32, #tpu.memory_space<smem>>
    %c55 = arith.constant 55 : index
    %70 = memref.load %arg1[%c55] : memref<98xf32, #tpu.memory_space<smem>>
    %c56 = arith.constant 56 : index
    %71 = memref.load %arg1[%c56] : memref<98xf32, #tpu.memory_space<smem>>
    %c57 = arith.constant 57 : index
    %72 = memref.load %arg1[%c57] : memref<98xf32, #tpu.memory_space<smem>>
    %c58 = arith.constant 58 : index
    %73 = memref.load %arg1[%c58] : memref<98xf32, #tpu.memory_space<smem>>
    %c59 = arith.constant 59 : index
    %74 = memref.load %arg1[%c59] : memref<98xf32, #tpu.memory_space<smem>>
    %c60 = arith.constant 60 : index
    %75 = memref.load %arg1[%c60] : memref<98xf32, #tpu.memory_space<smem>>
    %c61 = arith.constant 61 : index
    %76 = memref.load %arg1[%c61] : memref<98xf32, #tpu.memory_space<smem>>
    %c62 = arith.constant 62 : index
    %77 = memref.load %arg1[%c62] : memref<98xf32, #tpu.memory_space<smem>>
    %c63 = arith.constant 63 : index
    %78 = memref.load %arg1[%c63] : memref<98xf32, #tpu.memory_space<smem>>
    %c64_16 = arith.constant 64 : index
    %79 = memref.load %arg1[%c64_16] : memref<98xf32, #tpu.memory_space<smem>>
    %c65 = arith.constant 65 : index
    %80 = memref.load %arg1[%c65] : memref<98xf32, #tpu.memory_space<smem>>
    %c66 = arith.constant 66 : index
    %81 = memref.load %arg1[%c66] : memref<98xf32, #tpu.memory_space<smem>>
    %c67 = arith.constant 67 : index
    %82 = memref.load %arg1[%c67] : memref<98xf32, #tpu.memory_space<smem>>
    %c68 = arith.constant 68 : index
    %83 = memref.load %arg1[%c68] : memref<98xf32, #tpu.memory_space<smem>>
    %c69 = arith.constant 69 : index
    %84 = memref.load %arg1[%c69] : memref<98xf32, #tpu.memory_space<smem>>
    %c70 = arith.constant 70 : index
    %85 = memref.load %arg1[%c70] : memref<98xf32, #tpu.memory_space<smem>>
    %c71 = arith.constant 71 : index
    %86 = memref.load %arg1[%c71] : memref<98xf32, #tpu.memory_space<smem>>
    %c72 = arith.constant 72 : index
    %87 = memref.load %arg1[%c72] : memref<98xf32, #tpu.memory_space<smem>>
    %c73 = arith.constant 73 : index
    %88 = memref.load %arg1[%c73] : memref<98xf32, #tpu.memory_space<smem>>
    %c74 = arith.constant 74 : index
    %89 = memref.load %arg1[%c74] : memref<98xf32, #tpu.memory_space<smem>>
    %c75 = arith.constant 75 : index
    %90 = memref.load %arg1[%c75] : memref<98xf32, #tpu.memory_space<smem>>
    %c76 = arith.constant 76 : index
    %91 = memref.load %arg1[%c76] : memref<98xf32, #tpu.memory_space<smem>>
    %c77 = arith.constant 77 : index
    %92 = memref.load %arg1[%c77] : memref<98xf32, #tpu.memory_space<smem>>
    %c78 = arith.constant 78 : index
    %93 = memref.load %arg1[%c78] : memref<98xf32, #tpu.memory_space<smem>>
    %c79 = arith.constant 79 : index
    %94 = memref.load %arg1[%c79] : memref<98xf32, #tpu.memory_space<smem>>
    %c80 = arith.constant 80 : index
    %95 = memref.load %arg1[%c80] : memref<98xf32, #tpu.memory_space<smem>>
    %c81 = arith.constant 81 : index
    %96 = memref.load %arg1[%c81] : memref<98xf32, #tpu.memory_space<smem>>
    %c82 = arith.constant 82 : index
    %97 = memref.load %arg1[%c82] : memref<98xf32, #tpu.memory_space<smem>>
    %c83 = arith.constant 83 : index
    %98 = memref.load %arg1[%c83] : memref<98xf32, #tpu.memory_space<smem>>
    %c84 = arith.constant 84 : index
    %99 = memref.load %arg1[%c84] : memref<98xf32, #tpu.memory_space<smem>>
    %c85 = arith.constant 85 : index
    %100 = memref.load %arg1[%c85] : memref<98xf32, #tpu.memory_space<smem>>
    %c86 = arith.constant 86 : index
    %101 = memref.load %arg1[%c86] : memref<98xf32, #tpu.memory_space<smem>>
    %c87 = arith.constant 87 : index
    %102 = memref.load %arg1[%c87] : memref<98xf32, #tpu.memory_space<smem>>
    %c88 = arith.constant 88 : index
    %103 = memref.load %arg1[%c88] : memref<98xf32, #tpu.memory_space<smem>>
    %c89 = arith.constant 89 : index
    %104 = memref.load %arg1[%c89] : memref<98xf32, #tpu.memory_space<smem>>
    %c90 = arith.constant 90 : index
    %105 = memref.load %arg1[%c90] : memref<98xf32, #tpu.memory_space<smem>>
    %c91 = arith.constant 91 : index
    %106 = memref.load %arg1[%c91] : memref<98xf32, #tpu.memory_space<smem>>
    %c92 = arith.constant 92 : index
    %107 = memref.load %arg1[%c92] : memref<98xf32, #tpu.memory_space<smem>>
    %c93 = arith.constant 93 : index
    %108 = memref.load %arg1[%c93] : memref<98xf32, #tpu.memory_space<smem>>
    %c94 = arith.constant 94 : index
    %109 = memref.load %arg1[%c94] : memref<98xf32, #tpu.memory_space<smem>>
    %c95 = arith.constant 95 : index
    %110 = memref.load %arg1[%c95] : memref<98xf32, #tpu.memory_space<smem>>
    %c96 = arith.constant 96 : index
    %111 = memref.load %arg1[%c96] : memref<98xf32, #tpu.memory_space<smem>>
    %c97 = arith.constant 97 : index
    %112 = memref.load %arg1[%c97] : memref<98xf32, #tpu.memory_space<smem>>
    %c0_17 = arith.constant 0 : index
    %c0_18 = arith.constant 0 : index
    %113 = vector.load %arg2[%c0_17, %c0_18] : memref<1x256xi32, #tpu.memory_space<vmem>>, vector<1x256xi32>
    %c0_19 = arith.constant 0 : index
    %c13_20 = arith.constant 13 : index
    %114 = vector.load %arg5[%c0_19, %c13_20] : memref<2x384xf32, #tpu.memory_space<vmem>>, vector<1x256xf32>
    %115 = vector.broadcast %15 : f32 to vector<1x256xf32>
    %116 = arith.mulf %115, %114 : vector<1x256xf32>
    %c0_21 = arith.constant 0 : index
    %c29_22 = arith.constant 29 : index
    %117 = vector.load %arg5[%c0_21, %c29_22] : memref<2x384xf32, #tpu.memory_space<vmem>>, vector<1x256xf32>
    %118 = vector.broadcast %22 : f32 to vector<1x256xf32>
    %119 = arith.mulf %118, %117 : vector<1x256xf32>
    %c0_23 = arith.constant 0 : index
    %c45_24 = arith.constant 45 : index
    %120 = vector.load %arg5[%c0_23, %c45_24] : memref<2x384xf32, #tpu.memory_space<vmem>>, vector<1x256xf32>
    %121 = vector.broadcast %29 : f32 to vector<1x256xf32>
    %122 = arith.mulf %121, %120 : vector<1x256xf32>
    %c0_25 = arith.constant 0 : index
    %c61_26 = arith.constant 61 : index
    %123 = vector.load %arg5[%c0_25, %c61_26] : memref<2x384xf32, #tpu.memory_space<vmem>>, vector<1x256xf32>
    %124 = vector.broadcast %36 : f32 to vector<1x256xf32>
    %125 = arith.mulf %124, %123 : vector<1x256xf32>
    %c0_27 = arith.constant 0 : index
    %c77_28 = arith.constant 77 : index
    %126 = vector.load %arg5[%c0_27, %c77_28] : memref<2x384xf32, #tpu.memory_space<vmem>>, vector<1x256xf32>
    %127 = vector.broadcast %43 : f32 to vector<1x256xf32>
    %128 = arith.mulf %127, %126 : vector<1x256xf32>
    %c0_29 = arith.constant 0 : index
    %c93_30 = arith.constant 93 : index
    %129 = vector.load %arg5[%c0_29, %c93_30] : memref<2x384xf32, #tpu.memory_space<vmem>>, vector<1x256xf32>
    %130 = vector.broadcast %50 : f32 to vector<1x256xf32>
    %131 = arith.mulf %130, %129 : vector<1x256xf32>
    %c0_31 = arith.constant 0 : index
    %c109 = arith.constant 109 : index
    %132 = vector.load %arg5[%c0_31, %c109] : memref<2x384xf32, #tpu.memory_space<vmem>>, vector<1x256xf32>
    %133 = vector.broadcast %57 : f32 to vector<1x256xf32>
    %134 = arith.mulf %133, %132 : vector<1x256xf32>
    %c1_32 = arith.constant 1 : index
    %c13_33 = arith.constant 13 : index
    %135 = vector.load %arg5[%c1_32, %c13_33] : memref<2x384xf32, #tpu.memory_space<vmem>>, vector<1x256xf32>
    %136 = vector.broadcast %64 : f32 to vector<1x256xf32>
    %137 = arith.mulf %136, %135 : vector<1x256xf32>
    %c1_34 = arith.constant 1 : index
    %c29_35 = arith.constant 29 : index
    %138 = vector.load %arg5[%c1_34, %c29_35] : memref<2x384xf32, #tpu.memory_space<vmem>>, vector<1x256xf32>
    %139 = vector.broadcast %71 : f32 to vector<1x256xf32>
    %140 = arith.mulf %139, %138 : vector<1x256xf32>
    %c1_36 = arith.constant 1 : index
    %c45_37 = arith.constant 45 : index
    %141 = vector.load %arg5[%c1_36, %c45_37] : memref<2x384xf32, #tpu.memory_space<vmem>>, vector<1x256xf32>
    %142 = vector.broadcast %78 : f32 to vector<1x256xf32>
    %143 = arith.mulf %142, %141 : vector<1x256xf32>
    %c1_38 = arith.constant 1 : index
    %c61_39 = arith.constant 61 : index
    %144 = vector.load %arg5[%c1_38, %c61_39] : memref<2x384xf32, #tpu.memory_space<vmem>>, vector<1x256xf32>
    %145 = vector.broadcast %85 : f32 to vector<1x256xf32>
    %146 = arith.mulf %145, %144 : vector<1x256xf32>
    %c1_40 = arith.constant 1 : index
    %c77_41 = arith.constant 77 : index
    %147 = vector.load %arg5[%c1_40, %c77_41] : memref<2x384xf32, #tpu.memory_space<vmem>>, vector<1x256xf32>
    %148 = vector.broadcast %92 : f32 to vector<1x256xf32>
    %149 = arith.mulf %148, %147 : vector<1x256xf32>
    %c1_42 = arith.constant 1 : index
    %c93_43 = arith.constant 93 : index
    %150 = vector.load %arg5[%c1_42, %c93_43] : memref<2x384xf32, #tpu.memory_space<vmem>>, vector<1x256xf32>
    %151 = vector.broadcast %99 : f32 to vector<1x256xf32>
    %152 = arith.mulf %151, %150 : vector<1x256xf32>
    %c1_44 = arith.constant 1 : index
    %c109_45 = arith.constant 109 : index
    %153 = vector.load %arg5[%c1_44, %c109_45] : memref<2x384xf32, #tpu.memory_space<vmem>>, vector<1x256xf32>
    %154 = vector.broadcast %106 : f32 to vector<1x256xf32>
    %155 = arith.mulf %154, %153 : vector<1x256xf32>
    %156 = arith.addf %116, %119 : vector<1x256xf32>
    %157 = arith.addf %122, %125 : vector<1x256xf32>
    %158 = arith.addf %128, %131 : vector<1x256xf32>
    %159 = arith.addf %134, %137 : vector<1x256xf32>
    %160 = arith.addf %140, %143 : vector<1x256xf32>
    %161 = arith.addf %146, %149 : vector<1x256xf32>
    %162 = arith.addf %152, %155 : vector<1x256xf32>
    %163 = arith.addf %156, %157 : vector<1x256xf32>
    %164 = arith.addf %158, %159 : vector<1x256xf32>
    %165 = arith.addf %160, %161 : vector<1x256xf32>
    %166 = arith.addf %163, %164 : vector<1x256xf32>
    %167 = arith.addf %165, %162 : vector<1x256xf32>
    %168 = arith.addf %166, %167 : vector<1x256xf32>
    %c3_i32 = arith.constant 3 : i32
    %169 = vector.broadcast %c3_i32 : i32 to vector<1x256xi32>
    %170 = arith.cmpi sge, %113, %169 : vector<1x256xi32>
    %c19_i32 = arith.constant 19 : i32
    %171 = vector.broadcast %c19_i32 : i32 to vector<1x256xi32>
    %172 = arith.cmpi slt, %113, %171 : vector<1x256xi32>
    %173 = arith.andi %170, %172 : vector<1x256xi1>
    %cst_46 = arith.constant 0.000000e+00 : f32
    %174 = vector.broadcast %cst_46 : f32 to vector<1x256xf32>
    %175 = arith.select %173, %168, %174 : vector<1x256xi1>, vector<1x256xf32>
    %c0_47 = arith.constant 0 : index
    %c14_48 = arith.constant 14 : index
    %176 = vector.load %arg5[%c0_47, %c14_48] : memref<2x384xf32, #tpu.memory_space<vmem>>, vector<1x256xf32>
    %177 = vector.broadcast %16 : f32 to vector<1x256xf32>
    %178 = arith.mulf %177, %176 : vector<1x256xf32>
    %c0_49 = arith.constant 0 : index
    %c30_50 = arith.constant 30 : index
    %179 = vector.load %arg5[%c0_49, %c30_50] : memref<2x384xf32, #tpu.memory_space<vmem>>, vector<1x256xf32>
    %180 = vector.broadcast %23 : f32 to vector<1x256xf32>
    %181 = arith.mulf %180, %179 : vector<1x256xf32>
    %c0_51 = arith.constant 0 : index
    %c46_52 = arith.constant 46 : index
    %182 = vector.load %arg5[%c0_51, %c46_52] : memref<2x384xf32, #tpu.memory_space<vmem>>, vector<1x256xf32>
    %183 = vector.broadcast %30 : f32 to vector<1x256xf32>
    %184 = arith.mulf %183, %182 : vector<1x256xf32>
    %c0_53 = arith.constant 0 : index
    %c62_54 = arith.constant 62 : index
    %185 = vector.load %arg5[%c0_53, %c62_54] : memref<2x384xf32, #tpu.memory_space<vmem>>, vector<1x256xf32>
    %186 = vector.broadcast %37 : f32 to vector<1x256xf32>
    %187 = arith.mulf %186, %185 : vector<1x256xf32>
    %c0_55 = arith.constant 0 : index
    %c78_56 = arith.constant 78 : index
    %188 = vector.load %arg5[%c0_55, %c78_56] : memref<2x384xf32, #tpu.memory_space<vmem>>, vector<1x256xf32>
    %189 = vector.broadcast %44 : f32 to vector<1x256xf32>
    %190 = arith.mulf %189, %188 : vector<1x256xf32>
    %c0_57 = arith.constant 0 : index
    %c94_58 = arith.constant 94 : index
    %191 = vector.load %arg5[%c0_57, %c94_58] : memref<2x384xf32, #tpu.memory_space<vmem>>, vector<1x256xf32>
    %192 = vector.broadcast %51 : f32 to vector<1x256xf32>
    %193 = arith.mulf %192, %191 : vector<1x256xf32>
    %c0_59 = arith.constant 0 : index
    %c110 = arith.constant 110 : index
    %194 = vector.load %arg5[%c0_59, %c110] : memref<2x384xf32, #tpu.memory_space<vmem>>, vector<1x256xf32>
    %195 = vector.broadcast %58 : f32 to vector<1x256xf32>
    %196 = arith.mulf %195, %194 : vector<1x256xf32>
    %c1_60 = arith.constant 1 : index
    %c14_61 = arith.constant 14 : index
    %197 = vector.load %arg5[%c1_60, %c14_61] : memref<2x384xf32, #tpu.memory_space<vmem>>, vector<1x256xf32>
    %198 = vector.broadcast %65 : f32 to vector<1x256xf32>
    %199 = arith.mulf %198, %197 : vector<1x256xf32>
    %c1_62 = arith.constant 1 : index
    %c30_63 = arith.constant 30 : index
    %200 = vector.load %arg5[%c1_62, %c30_63] : memref<2x384xf32, #tpu.memory_space<vmem>>, vector<1x256xf32>
    %201 = vector.broadcast %72 : f32 to vector<1x256xf32>
    %202 = arith.mulf %201, %200 : vector<1x256xf32>
    %c1_64 = arith.constant 1 : index
    %c46_65 = arith.constant 46 : index
    %203 = vector.load %arg5[%c1_64, %c46_65] : memref<2x384xf32, #tpu.memory_space<vmem>>, vector<1x256xf32>
    %204 = vector.broadcast %79 : f32 to vector<1x256xf32>
    %205 = arith.mulf %204, %203 : vector<1x256xf32>
    %c1_66 = arith.constant 1 : index
    %c62_67 = arith.constant 62 : index
    %206 = vector.load %arg5[%c1_66, %c62_67] : memref<2x384xf32, #tpu.memory_space<vmem>>, vector<1x256xf32>
    %207 = vector.broadcast %86 : f32 to vector<1x256xf32>
    %208 = arith.mulf %207, %206 : vector<1x256xf32>
    %c1_68 = arith.constant 1 : index
    %c78_69 = arith.constant 78 : index
    %209 = vector.load %arg5[%c1_68, %c78_69] : memref<2x384xf32, #tpu.memory_space<vmem>>, vector<1x256xf32>
    %210 = vector.broadcast %93 : f32 to vector<1x256xf32>
    %211 = arith.mulf %210, %209 : vector<1x256xf32>
    %c1_70 = arith.constant 1 : index
    %c94_71 = arith.constant 94 : index
    %212 = vector.load %arg5[%c1_70, %c94_71] : memref<2x384xf32, #tpu.memory_space<vmem>>, vector<1x256xf32>
    %213 = vector.broadcast %100 : f32 to vector<1x256xf32>
    %214 = arith.mulf %213, %212 : vector<1x256xf32>
    %c1_72 = arith.constant 1 : index
    %c110_73 = arith.constant 110 : index
    %215 = vector.load %arg5[%c1_72, %c110_73] : memref<2x384xf32, #tpu.memory_space<vmem>>, vector<1x256xf32>
    %216 = vector.broadcast %107 : f32 to vector<1x256xf32>
    %217 = arith.mulf %216, %215 : vector<1x256xf32>
    %218 = arith.addf %178, %181 : vector<1x256xf32>
    %219 = arith.addf %184, %187 : vector<1x256xf32>
    %220 = arith.addf %190, %193 : vector<1x256xf32>
    %221 = arith.addf %196, %199 : vector<1x256xf32>
    %222 = arith.addf %202, %205 : vector<1x256xf32>
    %223 = arith.addf %208, %211 : vector<1x256xf32>
    %224 = arith.addf %214, %217 : vector<1x256xf32>
    %225 = arith.addf %218, %219 : vector<1x256xf32>
    %226 = arith.addf %220, %221 : vector<1x256xf32>
    %227 = arith.addf %222, %223 : vector<1x256xf32>
    %228 = arith.addf %225, %226 : vector<1x256xf32>
    %229 = arith.addf %227, %224 : vector<1x256xf32>
    %230 = arith.addf %228, %229 : vector<1x256xf32>
    %c2_i32 = arith.constant 2 : i32
    %231 = vector.broadcast %c2_i32 : i32 to vector<1x256xi32>
    %232 = arith.cmpi sge, %113, %231 : vector<1x256xi32>
    %c18_i32 = arith.constant 18 : i32
    %233 = vector.broadcast %c18_i32 : i32 to vector<1x256xi32>
    %234 = arith.cmpi slt, %113, %233 : vector<1x256xi32>
    %235 = arith.andi %232, %234 : vector<1x256xi1>
    %cst_74 = arith.constant 0.000000e+00 : f32
    %236 = vector.broadcast %cst_74 : f32 to vector<1x256xf32>
    %237 = arith.select %235, %230, %236 : vector<1x256xi1>, vector<1x256xf32>
    %c0_75 = arith.constant 0 : index
    %c15_76 = arith.constant 15 : index
    %238 = vector.load %arg5[%c0_75, %c15_76] : memref<2x384xf32, #tpu.memory_space<vmem>>, vector<1x256xf32>
    %239 = vector.broadcast %17 : f32 to vector<1x256xf32>
    %240 = arith.mulf %239, %238 : vector<1x256xf32>
    %c0_77 = arith.constant 0 : index
    %c31_78 = arith.constant 31 : index
    %241 = vector.load %arg5[%c0_77, %c31_78] : memref<2x384xf32, #tpu.memory_space<vmem>>, vector<1x256xf32>
    %242 = vector.broadcast %24 : f32 to vector<1x256xf32>
    %243 = arith.mulf %242, %241 : vector<1x256xf32>
    %c0_79 = arith.constant 0 : index
    %c47_80 = arith.constant 47 : index
    %244 = vector.load %arg5[%c0_79, %c47_80] : memref<2x384xf32, #tpu.memory_space<vmem>>, vector<1x256xf32>
    %245 = vector.broadcast %31 : f32 to vector<1x256xf32>
    %246 = arith.mulf %245, %244 : vector<1x256xf32>
    %c0_81 = arith.constant 0 : index
    %c63_82 = arith.constant 63 : index
    %247 = vector.load %arg5[%c0_81, %c63_82] : memref<2x384xf32, #tpu.memory_space<vmem>>, vector<1x256xf32>
    %248 = vector.broadcast %38 : f32 to vector<1x256xf32>
    %249 = arith.mulf %248, %247 : vector<1x256xf32>
    %c0_83 = arith.constant 0 : index
    %c79_84 = arith.constant 79 : index
    %250 = vector.load %arg5[%c0_83, %c79_84] : memref<2x384xf32, #tpu.memory_space<vmem>>, vector<1x256xf32>
    %251 = vector.broadcast %45 : f32 to vector<1x256xf32>
    %252 = arith.mulf %251, %250 : vector<1x256xf32>
    %c0_85 = arith.constant 0 : index
    %c95_86 = arith.constant 95 : index
    %253 = vector.load %arg5[%c0_85, %c95_86] : memref<2x384xf32, #tpu.memory_space<vmem>>, vector<1x256xf32>
    %254 = vector.broadcast %52 : f32 to vector<1x256xf32>
    %255 = arith.mulf %254, %253 : vector<1x256xf32>
    %c0_87 = arith.constant 0 : index
    %c111 = arith.constant 111 : index
    %256 = vector.load %arg5[%c0_87, %c111] : memref<2x384xf32, #tpu.memory_space<vmem>>, vector<1x256xf32>
    %257 = vector.broadcast %59 : f32 to vector<1x256xf32>
    %258 = arith.mulf %257, %256 : vector<1x256xf32>
    %c1_88 = arith.constant 1 : index
    %c15_89 = arith.constant 15 : index
    %259 = vector.load %arg5[%c1_88, %c15_89] : memref<2x384xf32, #tpu.memory_space<vmem>>, vector<1x256xf32>
    %260 = vector.broadcast %66 : f32 to vector<1x256xf32>
    %261 = arith.mulf %260, %259 : vector<1x256xf32>
    %c1_90 = arith.constant 1 : index
    %c31_91 = arith.constant 31 : index
    %262 = vector.load %arg5[%c1_90, %c31_91] : memref<2x384xf32, #tpu.memory_space<vmem>>, vector<1x256xf32>
    %263 = vector.broadcast %73 : f32 to vector<1x256xf32>
    %264 = arith.mulf %263, %262 : vector<1x256xf32>
    %c1_92 = arith.constant 1 : index
    %c47_93 = arith.constant 47 : index
    %265 = vector.load %arg5[%c1_92, %c47_93] : memref<2x384xf32, #tpu.memory_space<vmem>>, vector<1x256xf32>
    %266 = vector.broadcast %80 : f32 to vector<1x256xf32>
    %267 = arith.mulf %266, %265 : vector<1x256xf32>
    %c1_94 = arith.constant 1 : index
    %c63_95 = arith.constant 63 : index
    %268 = vector.load %arg5[%c1_94, %c63_95] : memref<2x384xf32, #tpu.memory_space<vmem>>, vector<1x256xf32>
    %269 = vector.broadcast %87 : f32 to vector<1x256xf32>
    %270 = arith.mulf %269, %268 : vector<1x256xf32>
    %c1_96 = arith.constant 1 : index
    %c79_97 = arith.constant 79 : index
    %271 = vector.load %arg5[%c1_96, %c79_97] : memref<2x384xf32, #tpu.memory_space<vmem>>, vector<1x256xf32>
    %272 = vector.broadcast %94 : f32 to vector<1x256xf32>
    %273 = arith.mulf %272, %271 : vector<1x256xf32>
    %c1_98 = arith.constant 1 : index
    %c95_99 = arith.constant 95 : index
    %274 = vector.load %arg5[%c1_98, %c95_99] : memref<2x384xf32, #tpu.memory_space<vmem>>, vector<1x256xf32>
    %275 = vector.broadcast %101 : f32 to vector<1x256xf32>
    %276 = arith.mulf %275, %274 : vector<1x256xf32>
    %c1_100 = arith.constant 1 : index
    %c111_101 = arith.constant 111 : index
    %277 = vector.load %arg5[%c1_100, %c111_101] : memref<2x384xf32, #tpu.memory_space<vmem>>, vector<1x256xf32>
    %278 = vector.broadcast %108 : f32 to vector<1x256xf32>
    %279 = arith.mulf %278, %277 : vector<1x256xf32>
    %280 = arith.addf %240, %243 : vector<1x256xf32>
    %281 = arith.addf %246, %249 : vector<1x256xf32>
    %282 = arith.addf %252, %255 : vector<1x256xf32>
    %283 = arith.addf %258, %261 : vector<1x256xf32>
    %284 = arith.addf %264, %267 : vector<1x256xf32>
    %285 = arith.addf %270, %273 : vector<1x256xf32>
    %286 = arith.addf %276, %279 : vector<1x256xf32>
    %287 = arith.addf %280, %281 : vector<1x256xf32>
    %288 = arith.addf %282, %283 : vector<1x256xf32>
    %289 = arith.addf %284, %285 : vector<1x256xf32>
    %290 = arith.addf %287, %288 : vector<1x256xf32>
    %291 = arith.addf %289, %286 : vector<1x256xf32>
    %292 = arith.addf %290, %291 : vector<1x256xf32>
    %c1_i32 = arith.constant 1 : i32
    %293 = vector.broadcast %c1_i32 : i32 to vector<1x256xi32>
    %294 = arith.cmpi sge, %113, %293 : vector<1x256xi32>
    %c17_i32 = arith.constant 17 : i32
    %295 = vector.broadcast %c17_i32 : i32 to vector<1x256xi32>
    %296 = arith.cmpi slt, %113, %295 : vector<1x256xi32>
    %297 = arith.andi %294, %296 : vector<1x256xi1>
    %cst_102 = arith.constant 0.000000e+00 : f32
    %298 = vector.broadcast %cst_102 : f32 to vector<1x256xf32>
    %299 = arith.select %297, %292, %298 : vector<1x256xi1>, vector<1x256xf32>
    %c0_103 = arith.constant 0 : index
    %c16_104 = arith.constant 16 : index
    %300 = vector.load %arg5[%c0_103, %c16_104] : memref<2x384xf32, #tpu.memory_space<vmem>>, vector<1x256xf32>
    %301 = vector.broadcast %18 : f32 to vector<1x256xf32>
    %302 = arith.mulf %301, %300 : vector<1x256xf32>
    %c0_105 = arith.constant 0 : index
    %c32_106 = arith.constant 32 : index
    %303 = vector.load %arg5[%c0_105, %c32_106] : memref<2x384xf32, #tpu.memory_space<vmem>>, vector<1x256xf32>
    %304 = vector.broadcast %25 : f32 to vector<1x256xf32>
    %305 = arith.mulf %304, %303 : vector<1x256xf32>
    %c0_107 = arith.constant 0 : index
    %c48_108 = arith.constant 48 : index
    %306 = vector.load %arg5[%c0_107, %c48_108] : memref<2x384xf32, #tpu.memory_space<vmem>>, vector<1x256xf32>
    %307 = vector.broadcast %32 : f32 to vector<1x256xf32>
    %308 = arith.mulf %307, %306 : vector<1x256xf32>
    %c0_109 = arith.constant 0 : index
    %c64_110 = arith.constant 64 : index
    %309 = vector.load %arg5[%c0_109, %c64_110] : memref<2x384xf32, #tpu.memory_space<vmem>>, vector<1x256xf32>
    %310 = vector.broadcast %39 : f32 to vector<1x256xf32>
    %311 = arith.mulf %310, %309 : vector<1x256xf32>
    %c0_111 = arith.constant 0 : index
    %c80_112 = arith.constant 80 : index
    %312 = vector.load %arg5[%c0_111, %c80_112] : memref<2x384xf32, #tpu.memory_space<vmem>>, vector<1x256xf32>
    %313 = vector.broadcast %46 : f32 to vector<1x256xf32>
    %314 = arith.mulf %313, %312 : vector<1x256xf32>
    %c0_113 = arith.constant 0 : index
    %c96_114 = arith.constant 96 : index
    %315 = vector.load %arg5[%c0_113, %c96_114] : memref<2x384xf32, #tpu.memory_space<vmem>>, vector<1x256xf32>
    %316 = vector.broadcast %53 : f32 to vector<1x256xf32>
    %317 = arith.mulf %316, %315 : vector<1x256xf32>
    %c0_115 = arith.constant 0 : index
    %c112 = arith.constant 112 : index
    %318 = vector.load %arg5[%c0_115, %c112] : memref<2x384xf32, #tpu.memory_space<vmem>>, vector<1x256xf32>
    %319 = vector.broadcast %60 : f32 to vector<1x256xf32>
    %320 = arith.mulf %319, %318 : vector<1x256xf32>
    %c1_116 = arith.constant 1 : index
    %c16_117 = arith.constant 16 : index
    %321 = vector.load %arg5[%c1_116, %c16_117] : memref<2x384xf32, #tpu.memory_space<vmem>>, vector<1x256xf32>
    %322 = vector.broadcast %67 : f32 to vector<1x256xf32>
    %323 = arith.mulf %322, %321 : vector<1x256xf32>
    %c1_118 = arith.constant 1 : index
    %c32_119 = arith.constant 32 : index
    %324 = vector.load %arg5[%c1_118, %c32_119] : memref<2x384xf32, #tpu.memory_space<vmem>>, vector<1x256xf32>
    %325 = vector.broadcast %74 : f32 to vector<1x256xf32>
    %326 = arith.mulf %325, %324 : vector<1x256xf32>
    %c1_120 = arith.constant 1 : index
    %c48_121 = arith.constant 48 : index
    %327 = vector.load %arg5[%c1_120, %c48_121] : memref<2x384xf32, #tpu.memory_space<vmem>>, vector<1x256xf32>
    %328 = vector.broadcast %81 : f32 to vector<1x256xf32>
    %329 = arith.mulf %328, %327 : vector<1x256xf32>
    %c1_122 = arith.constant 1 : index
    %c64_123 = arith.constant 64 : index
    %330 = vector.load %arg5[%c1_122, %c64_123] : memref<2x384xf32, #tpu.memory_space<vmem>>, vector<1x256xf32>
    %331 = vector.broadcast %88 : f32 to vector<1x256xf32>
    %332 = arith.mulf %331, %330 : vector<1x256xf32>
    %c1_124 = arith.constant 1 : index
    %c80_125 = arith.constant 80 : index
    %333 = vector.load %arg5[%c1_124, %c80_125] : memref<2x384xf32, #tpu.memory_space<vmem>>, vector<1x256xf32>
    %334 = vector.broadcast %95 : f32 to vector<1x256xf32>
    %335 = arith.mulf %334, %333 : vector<1x256xf32>
    %c1_126 = arith.constant 1 : index
    %c96_127 = arith.constant 96 : index
    %336 = vector.load %arg5[%c1_126, %c96_127] : memref<2x384xf32, #tpu.memory_space<vmem>>, vector<1x256xf32>
    %337 = vector.broadcast %102 : f32 to vector<1x256xf32>
    %338 = arith.mulf %337, %336 : vector<1x256xf32>
    %c1_128 = arith.constant 1 : index
    %c112_129 = arith.constant 112 : index
    %339 = vector.load %arg5[%c1_128, %c112_129] : memref<2x384xf32, #tpu.memory_space<vmem>>, vector<1x256xf32>
    %340 = vector.broadcast %109 : f32 to vector<1x256xf32>
    %341 = arith.mulf %340, %339 : vector<1x256xf32>
    %342 = arith.addf %302, %305 : vector<1x256xf32>
    %343 = arith.addf %308, %311 : vector<1x256xf32>
    %344 = arith.addf %314, %317 : vector<1x256xf32>
    %345 = arith.addf %320, %323 : vector<1x256xf32>
    %346 = arith.addf %326, %329 : vector<1x256xf32>
    %347 = arith.addf %332, %335 : vector<1x256xf32>
    %348 = arith.addf %338, %341 : vector<1x256xf32>
    %349 = arith.addf %342, %343 : vector<1x256xf32>
    %350 = arith.addf %344, %345 : vector<1x256xf32>
    %351 = arith.addf %346, %347 : vector<1x256xf32>
    %352 = arith.addf %349, %350 : vector<1x256xf32>
    %353 = arith.addf %351, %348 : vector<1x256xf32>
    %354 = arith.addf %352, %353 : vector<1x256xf32>
    %c0_130 = arith.constant 0 : index
    %c17_131 = arith.constant 17 : index
    %355 = vector.load %arg5[%c0_130, %c17_131] : memref<2x384xf32, #tpu.memory_space<vmem>>, vector<1x256xf32>
    %356 = vector.broadcast %19 : f32 to vector<1x256xf32>
    %357 = arith.mulf %356, %355 : vector<1x256xf32>
    %c0_132 = arith.constant 0 : index
    %c33_133 = arith.constant 33 : index
    %358 = vector.load %arg5[%c0_132, %c33_133] : memref<2x384xf32, #tpu.memory_space<vmem>>, vector<1x256xf32>
    %359 = vector.broadcast %26 : f32 to vector<1x256xf32>
    %360 = arith.mulf %359, %358 : vector<1x256xf32>
    %c0_134 = arith.constant 0 : index
    %c49_135 = arith.constant 49 : index
    %361 = vector.load %arg5[%c0_134, %c49_135] : memref<2x384xf32, #tpu.memory_space<vmem>>, vector<1x256xf32>
    %362 = vector.broadcast %33 : f32 to vector<1x256xf32>
    %363 = arith.mulf %362, %361 : vector<1x256xf32>
    %c0_136 = arith.constant 0 : index
    %c65_137 = arith.constant 65 : index
    %364 = vector.load %arg5[%c0_136, %c65_137] : memref<2x384xf32, #tpu.memory_space<vmem>>, vector<1x256xf32>
    %365 = vector.broadcast %40 : f32 to vector<1x256xf32>
    %366 = arith.mulf %365, %364 : vector<1x256xf32>
    %c0_138 = arith.constant 0 : index
    %c81_139 = arith.constant 81 : index
    %367 = vector.load %arg5[%c0_138, %c81_139] : memref<2x384xf32, #tpu.memory_space<vmem>>, vector<1x256xf32>
    %368 = vector.broadcast %47 : f32 to vector<1x256xf32>
    %369 = arith.mulf %368, %367 : vector<1x256xf32>
    %c0_140 = arith.constant 0 : index
    %c97_141 = arith.constant 97 : index
    %370 = vector.load %arg5[%c0_140, %c97_141] : memref<2x384xf32, #tpu.memory_space<vmem>>, vector<1x256xf32>
    %371 = vector.broadcast %54 : f32 to vector<1x256xf32>
    %372 = arith.mulf %371, %370 : vector<1x256xf32>
    %c0_142 = arith.constant 0 : index
    %c113 = arith.constant 113 : index
    %373 = vector.load %arg5[%c0_142, %c113] : memref<2x384xf32, #tpu.memory_space<vmem>>, vector<1x256xf32>
    %374 = vector.broadcast %61 : f32 to vector<1x256xf32>
    %375 = arith.mulf %374, %373 : vector<1x256xf32>
    %c1_143 = arith.constant 1 : index
    %c17_144 = arith.constant 17 : index
    %376 = vector.load %arg5[%c1_143, %c17_144] : memref<2x384xf32, #tpu.memory_space<vmem>>, vector<1x256xf32>
    %377 = vector.broadcast %68 : f32 to vector<1x256xf32>
    %378 = arith.mulf %377, %376 : vector<1x256xf32>
    %c1_145 = arith.constant 1 : index
    %c33_146 = arith.constant 33 : index
    %379 = vector.load %arg5[%c1_145, %c33_146] : memref<2x384xf32, #tpu.memory_space<vmem>>, vector<1x256xf32>
    %380 = vector.broadcast %75 : f32 to vector<1x256xf32>
    %381 = arith.mulf %380, %379 : vector<1x256xf32>
    %c1_147 = arith.constant 1 : index
    %c49_148 = arith.constant 49 : index
    %382 = vector.load %arg5[%c1_147, %c49_148] : memref<2x384xf32, #tpu.memory_space<vmem>>, vector<1x256xf32>
    %383 = vector.broadcast %82 : f32 to vector<1x256xf32>
    %384 = arith.mulf %383, %382 : vector<1x256xf32>
    %c1_149 = arith.constant 1 : index
    %c65_150 = arith.constant 65 : index
    %385 = vector.load %arg5[%c1_149, %c65_150] : memref<2x384xf32, #tpu.memory_space<vmem>>, vector<1x256xf32>
    %386 = vector.broadcast %89 : f32 to vector<1x256xf32>
    %387 = arith.mulf %386, %385 : vector<1x256xf32>
    %c1_151 = arith.constant 1 : index
    %c81_152 = arith.constant 81 : index
    %388 = vector.load %arg5[%c1_151, %c81_152] : memref<2x384xf32, #tpu.memory_space<vmem>>, vector<1x256xf32>
    %389 = vector.broadcast %96 : f32 to vector<1x256xf32>
    %390 = arith.mulf %389, %388 : vector<1x256xf32>
    %c1_153 = arith.constant 1 : index
    %c97_154 = arith.constant 97 : index
    %391 = vector.load %arg5[%c1_153, %c97_154] : memref<2x384xf32, #tpu.memory_space<vmem>>, vector<1x256xf32>
    %392 = vector.broadcast %103 : f32 to vector<1x256xf32>
    %393 = arith.mulf %392, %391 : vector<1x256xf32>
    %c1_155 = arith.constant 1 : index
    %c113_156 = arith.constant 113 : index
    %394 = vector.load %arg5[%c1_155, %c113_156] : memref<2x384xf32, #tpu.memory_space<vmem>>, vector<1x256xf32>
    %395 = vector.broadcast %110 : f32 to vector<1x256xf32>
    %396 = arith.mulf %395, %394 : vector<1x256xf32>
    %397 = arith.addf %357, %360 : vector<1x256xf32>
    %398 = arith.addf %363, %366 : vector<1x256xf32>
    %399 = arith.addf %369, %372 : vector<1x256xf32>
    %400 = arith.addf %375, %378 : vector<1x256xf32>
    %401 = arith.addf %381, %384 : vector<1x256xf32>
    %402 = arith.addf %387, %390 : vector<1x256xf32>
    %403 = arith.addf %393, %396 : vector<1x256xf32>
    %404 = arith.addf %397, %398 : vector<1x256xf32>
    %405 = arith.addf %399, %400 : vector<1x256xf32>
    %406 = arith.addf %401, %402 : vector<1x256xf32>
    %407 = arith.addf %404, %405 : vector<1x256xf32>
    %408 = arith.addf %406, %403 : vector<1x256xf32>
    %409 = arith.addf %407, %408 : vector<1x256xf32>
    %c-1_i32 = arith.constant -1 : i32
    %410 = vector.broadcast %c-1_i32 : i32 to vector<1x256xi32>
    %411 = arith.cmpi sge, %113, %410 : vector<1x256xi32>
    %c15_i32 = arith.constant 15 : i32
    %412 = vector.broadcast %c15_i32 : i32 to vector<1x256xi32>
    %413 = arith.cmpi slt, %113, %412 : vector<1x256xi32>
    %414 = arith.andi %411, %413 : vector<1x256xi1>
    %cst_157 = arith.constant 0.000000e+00 : f32
    %415 = vector.broadcast %cst_157 : f32 to vector<1x256xf32>
    %416 = arith.select %414, %409, %415 : vector<1x256xi1>, vector<1x256xf32>
    %c0_158 = arith.constant 0 : index
    %c18_159 = arith.constant 18 : index
    %417 = vector.load %arg5[%c0_158, %c18_159] : memref<2x384xf32, #tpu.memory_space<vmem>>, vector<1x256xf32>
    %418 = vector.broadcast %20 : f32 to vector<1x256xf32>
    %419 = arith.mulf %418, %417 : vector<1x256xf32>
    %c0_160 = arith.constant 0 : index
    %c34_161 = arith.constant 34 : index
    %420 = vector.load %arg5[%c0_160, %c34_161] : memref<2x384xf32, #tpu.memory_space<vmem>>, vector<1x256xf32>
    %421 = vector.broadcast %27 : f32 to vector<1x256xf32>
    %422 = arith.mulf %421, %420 : vector<1x256xf32>
    %c0_162 = arith.constant 0 : index
    %c50_163 = arith.constant 50 : index
    %423 = vector.load %arg5[%c0_162, %c50_163] : memref<2x384xf32, #tpu.memory_space<vmem>>, vector<1x256xf32>
    %424 = vector.broadcast %34 : f32 to vector<1x256xf32>
    %425 = arith.mulf %424, %423 : vector<1x256xf32>
    %c0_164 = arith.constant 0 : index
    %c66_165 = arith.constant 66 : index
    %426 = vector.load %arg5[%c0_164, %c66_165] : memref<2x384xf32, #tpu.memory_space<vmem>>, vector<1x256xf32>
    %427 = vector.broadcast %41 : f32 to vector<1x256xf32>
    %428 = arith.mulf %427, %426 : vector<1x256xf32>
    %c0_166 = arith.constant 0 : index
    %c82_167 = arith.constant 82 : index
    %429 = vector.load %arg5[%c0_166, %c82_167] : memref<2x384xf32, #tpu.memory_space<vmem>>, vector<1x256xf32>
    %430 = vector.broadcast %48 : f32 to vector<1x256xf32>
    %431 = arith.mulf %430, %429 : vector<1x256xf32>
    %c0_168 = arith.constant 0 : index
    %c98 = arith.constant 98 : index
    %432 = vector.load %arg5[%c0_168, %c98] : memref<2x384xf32, #tpu.memory_space<vmem>>, vector<1x256xf32>
    %433 = vector.broadcast %55 : f32 to vector<1x256xf32>
    %434 = arith.mulf %433, %432 : vector<1x256xf32>
    %c0_169 = arith.constant 0 : index
    %c114 = arith.constant 114 : index
    %435 = vector.load %arg5[%c0_169, %c114] : memref<2x384xf32, #tpu.memory_space<vmem>>, vector<1x256xf32>
    %436 = vector.broadcast %62 : f32 to vector<1x256xf32>
    %437 = arith.mulf %436, %435 : vector<1x256xf32>
    %c1_170 = arith.constant 1 : index
    %c18_171 = arith.constant 18 : index
    %438 = vector.load %arg5[%c1_170, %c18_171] : memref<2x384xf32, #tpu.memory_space<vmem>>, vector<1x256xf32>
    %439 = vector.broadcast %69 : f32 to vector<1x256xf32>
    %440 = arith.mulf %439, %438 : vector<1x256xf32>
    %c1_172 = arith.constant 1 : index
    %c34_173 = arith.constant 34 : index
    %441 = vector.load %arg5[%c1_172, %c34_173] : memref<2x384xf32, #tpu.memory_space<vmem>>, vector<1x256xf32>
    %442 = vector.broadcast %76 : f32 to vector<1x256xf32>
    %443 = arith.mulf %442, %441 : vector<1x256xf32>
    %c1_174 = arith.constant 1 : index
    %c50_175 = arith.constant 50 : index
    %444 = vector.load %arg5[%c1_174, %c50_175] : memref<2x384xf32, #tpu.memory_space<vmem>>, vector<1x256xf32>
    %445 = vector.broadcast %83 : f32 to vector<1x256xf32>
    %446 = arith.mulf %445, %444 : vector<1x256xf32>
    %c1_176 = arith.constant 1 : index
    %c66_177 = arith.constant 66 : index
    %447 = vector.load %arg5[%c1_176, %c66_177] : memref<2x384xf32, #tpu.memory_space<vmem>>, vector<1x256xf32>
    %448 = vector.broadcast %90 : f32 to vector<1x256xf32>
    %449 = arith.mulf %448, %447 : vector<1x256xf32>
    %c1_178 = arith.constant 1 : index
    %c82_179 = arith.constant 82 : index
    %450 = vector.load %arg5[%c1_178, %c82_179] : memref<2x384xf32, #tpu.memory_space<vmem>>, vector<1x256xf32>
    %451 = vector.broadcast %97 : f32 to vector<1x256xf32>
    %452 = arith.mulf %451, %450 : vector<1x256xf32>
    %c1_180 = arith.constant 1 : index
    %c98_181 = arith.constant 98 : index
    %453 = vector.load %arg5[%c1_180, %c98_181] : memref<2x384xf32, #tpu.memory_space<vmem>>, vector<1x256xf32>
    %454 = vector.broadcast %104 : f32 to vector<1x256xf32>
    %455 = arith.mulf %454, %453 : vector<1x256xf32>
    %c1_182 = arith.constant 1 : index
    %c114_183 = arith.constant 114 : index
    %456 = vector.load %arg5[%c1_182, %c114_183] : memref<2x384xf32, #tpu.memory_space<vmem>>, vector<1x256xf32>
    %457 = vector.broadcast %111 : f32 to vector<1x256xf32>
    %458 = arith.mulf %457, %456 : vector<1x256xf32>
    %459 = arith.addf %419, %422 : vector<1x256xf32>
    %460 = arith.addf %425, %428 : vector<1x256xf32>
    %461 = arith.addf %431, %434 : vector<1x256xf32>
    %462 = arith.addf %437, %440 : vector<1x256xf32>
    %463 = arith.addf %443, %446 : vector<1x256xf32>
    %464 = arith.addf %449, %452 : vector<1x256xf32>
    %465 = arith.addf %455, %458 : vector<1x256xf32>
    %466 = arith.addf %459, %460 : vector<1x256xf32>
    %467 = arith.addf %461, %462 : vector<1x256xf32>
    %468 = arith.addf %463, %464 : vector<1x256xf32>
    %469 = arith.addf %466, %467 : vector<1x256xf32>
    %470 = arith.addf %468, %465 : vector<1x256xf32>
    %471 = arith.addf %469, %470 : vector<1x256xf32>
    %c-2_i32 = arith.constant -2 : i32
    %472 = vector.broadcast %c-2_i32 : i32 to vector<1x256xi32>
    %473 = arith.cmpi sge, %113, %472 : vector<1x256xi32>
    %c14_i32 = arith.constant 14 : i32
    %474 = vector.broadcast %c14_i32 : i32 to vector<1x256xi32>
    %475 = arith.cmpi slt, %113, %474 : vector<1x256xi32>
    %476 = arith.andi %473, %475 : vector<1x256xi1>
    %cst_184 = arith.constant 0.000000e+00 : f32
    %477 = vector.broadcast %cst_184 : f32 to vector<1x256xf32>
    %478 = arith.select %476, %471, %477 : vector<1x256xi1>, vector<1x256xf32>
    %c0_185 = arith.constant 0 : index
    %c19_186 = arith.constant 19 : index
    %479 = vector.load %arg5[%c0_185, %c19_186] : memref<2x384xf32, #tpu.memory_space<vmem>>, vector<1x256xf32>
    %480 = vector.broadcast %21 : f32 to vector<1x256xf32>
    %481 = arith.mulf %480, %479 : vector<1x256xf32>
    %c0_187 = arith.constant 0 : index
    %c35_188 = arith.constant 35 : index
    %482 = vector.load %arg5[%c0_187, %c35_188] : memref<2x384xf32, #tpu.memory_space<vmem>>, vector<1x256xf32>
    %483 = vector.broadcast %28 : f32 to vector<1x256xf32>
    %484 = arith.mulf %483, %482 : vector<1x256xf32>
    %c0_189 = arith.constant 0 : index
    %c51_190 = arith.constant 51 : index
    %485 = vector.load %arg5[%c0_189, %c51_190] : memref<2x384xf32, #tpu.memory_space<vmem>>, vector<1x256xf32>
    %486 = vector.broadcast %35 : f32 to vector<1x256xf32>
    %487 = arith.mulf %486, %485 : vector<1x256xf32>
    %c0_191 = arith.constant 0 : index
    %c67_192 = arith.constant 67 : index
    %488 = vector.load %arg5[%c0_191, %c67_192] : memref<2x384xf32, #tpu.memory_space<vmem>>, vector<1x256xf32>
    %489 = vector.broadcast %42 : f32 to vector<1x256xf32>
    %490 = arith.mulf %489, %488 : vector<1x256xf32>
    %c0_193 = arith.constant 0 : index
    %c83_194 = arith.constant 83 : index
    %491 = vector.load %arg5[%c0_193, %c83_194] : memref<2x384xf32, #tpu.memory_space<vmem>>, vector<1x256xf32>
    %492 = vector.broadcast %49 : f32 to vector<1x256xf32>
    %493 = arith.mulf %492, %491 : vector<1x256xf32>
    %c0_195 = arith.constant 0 : index
    %c99 = arith.constant 99 : index
    %494 = vector.load %arg5[%c0_195, %c99] : memref<2x384xf32, #tpu.memory_space<vmem>>, vector<1x256xf32>
    %495 = vector.broadcast %56 : f32 to vector<1x256xf32>
    %496 = arith.mulf %495, %494 : vector<1x256xf32>
    %c0_196 = arith.constant 0 : index
    %c115 = arith.constant 115 : index
    %497 = vector.load %arg5[%c0_196, %c115] : memref<2x384xf32, #tpu.memory_space<vmem>>, vector<1x256xf32>
    %498 = vector.broadcast %63 : f32 to vector<1x256xf32>
    %499 = arith.mulf %498, %497 : vector<1x256xf32>
    %c1_197 = arith.constant 1 : index
    %c19_198 = arith.constant 19 : index
    %500 = vector.load %arg5[%c1_197, %c19_198] : memref<2x384xf32, #tpu.memory_space<vmem>>, vector<1x256xf32>
    %501 = vector.broadcast %70 : f32 to vector<1x256xf32>
    %502 = arith.mulf %501, %500 : vector<1x256xf32>
    %c1_199 = arith.constant 1 : index
    %c35_200 = arith.constant 35 : index
    %503 = vector.load %arg5[%c1_199, %c35_200] : memref<2x384xf32, #tpu.memory_space<vmem>>, vector<1x256xf32>
    %504 = vector.broadcast %77 : f32 to vector<1x256xf32>
    %505 = arith.mulf %504, %503 : vector<1x256xf32>
    %c1_201 = arith.constant 1 : index
    %c51_202 = arith.constant 51 : index
    %506 = vector.load %arg5[%c1_201, %c51_202] : memref<2x384xf32, #tpu.memory_space<vmem>>, vector<1x256xf32>
    %507 = vector.broadcast %84 : f32 to vector<1x256xf32>
    %508 = arith.mulf %507, %506 : vector<1x256xf32>
    %c1_203 = arith.constant 1 : index
    %c67_204 = arith.constant 67 : index
    %509 = vector.load %arg5[%c1_203, %c67_204] : memref<2x384xf32, #tpu.memory_space<vmem>>, vector<1x256xf32>
    %510 = vector.broadcast %91 : f32 to vector<1x256xf32>
    %511 = arith.mulf %510, %509 : vector<1x256xf32>
    %c1_205 = arith.constant 1 : index
    %c83_206 = arith.constant 83 : index
    %512 = vector.load %arg5[%c1_205, %c83_206] : memref<2x384xf32, #tpu.memory_space<vmem>>, vector<1x256xf32>
    %513 = vector.broadcast %98 : f32 to vector<1x256xf32>
    %514 = arith.mulf %513, %512 : vector<1x256xf32>
    %c1_207 = arith.constant 1 : index
    %c99_208 = arith.constant 99 : index
    %515 = vector.load %arg5[%c1_207, %c99_208] : memref<2x384xf32, #tpu.memory_space<vmem>>, vector<1x256xf32>
    %516 = vector.broadcast %105 : f32 to vector<1x256xf32>
    %517 = arith.mulf %516, %515 : vector<1x256xf32>
    %c1_209 = arith.constant 1 : index
    %c115_210 = arith.constant 115 : index
    %518 = vector.load %arg5[%c1_209, %c115_210] : memref<2x384xf32, #tpu.memory_space<vmem>>, vector<1x256xf32>
    %519 = vector.broadcast %112 : f32 to vector<1x256xf32>
    %520 = arith.mulf %519, %518 : vector<1x256xf32>
    %521 = arith.addf %481, %484 : vector<1x256xf32>
    %522 = arith.addf %487, %490 : vector<1x256xf32>
    %523 = arith.addf %493, %496 : vector<1x256xf32>
    %524 = arith.addf %499, %502 : vector<1x256xf32>
    %525 = arith.addf %505, %508 : vector<1x256xf32>
    %526 = arith.addf %511, %514 : vector<1x256xf32>
    %527 = arith.addf %517, %520 : vector<1x256xf32>
    %528 = arith.addf %521, %522 : vector<1x256xf32>
    %529 = arith.addf %523, %524 : vector<1x256xf32>
    %530 = arith.addf %525, %526 : vector<1x256xf32>
    %531 = arith.addf %528, %529 : vector<1x256xf32>
    %532 = arith.addf %530, %527 : vector<1x256xf32>
    %533 = arith.addf %531, %532 : vector<1x256xf32>
    %c-3_i32 = arith.constant -3 : i32
    %534 = vector.broadcast %c-3_i32 : i32 to vector<1x256xi32>
    %535 = arith.cmpi sge, %113, %534 : vector<1x256xi32>
    %c13_i32 = arith.constant 13 : i32
    %536 = vector.broadcast %c13_i32 : i32 to vector<1x256xi32>
    %537 = arith.cmpi slt, %113, %536 : vector<1x256xi32>
    %538 = arith.andi %535, %537 : vector<1x256xi1>
    %cst_211 = arith.constant 0.000000e+00 : f32
    %539 = vector.broadcast %cst_211 : f32 to vector<1x256xf32>
    %540 = arith.select %538, %533, %539 : vector<1x256xi1>, vector<1x256xf32>
    %541 = arith.addf %175, %237 : vector<1x256xf32>
    %542 = arith.addf %299, %354 : vector<1x256xf32>
    %543 = arith.addf %416, %478 : vector<1x256xf32>
    %544 = arith.addf %541, %542 : vector<1x256xf32>
    %545 = arith.addf %543, %540 : vector<1x256xf32>
    %546 = arith.addf %544, %545 : vector<1x256xf32>
    %cst_212 = arith.constant 0.000000e+00 : f32
    %547 = vector.broadcast %cst_212 : f32 to vector<1x256xf32>
    %548 = arith.subf %547, %546 : vector<1x256xf32>
    %549 = math.exp %548 : vector<1x256xf32>
    %cst_213 = arith.constant 1.000000e+00 : f32
    %550 = vector.broadcast %cst_213 : f32 to vector<1x256xf32>
    %551 = arith.addf %550, %549 : vector<1x256xf32>
    %552 = tpu.reciprocal %551 : vector<1x256xf32> -> vector<1x256xf32>
    %553 = vector.shape_cast %552 : vector<1x256xf32> to vector<1x256xf32>
    %554 = vector.broadcast %553 : vector<1x256xf32> to vector<4x256xf32>
    %c0_214 = arith.constant 0 : index
    %c0_215 = arith.constant 0 : index
    %c0_216 = arith.constant 0 : index
    %555 = vector.load %arg3[%c0_214, %c0_215, %c0_216] : memref<1x4x256xf32, #tpu.memory_space<vmem>>, vector<1x4x256xf32>
    %556 = vector.shape_cast %555 : vector<1x4x256xf32> to vector<4x256xf32>
    %557 = arith.mulf %556, %554 : vector<4x256xf32>
    %c0_217 = arith.constant 0 : index
    %c0_218 = arith.constant 0 : index
    %c0_219 = arith.constant 0 : index
    %558 = vector.load %arg4[%c0_217, %c0_218, %c0_219] : memref<1x4x256xf32, #tpu.memory_space<vmem>>, vector<1x4x256xf32>
    %559 = vector.shape_cast %558 : vector<1x4x256xf32> to vector<4x256xf32>
    %560 = vector.shape_cast %557 : vector<4x256xf32> to vector<1x4x256xf32>
    tpu.vector_store %arg4[%c0_217, %c0_218, %c0_219], %560 {strides = array<i32>} : memref<1x4x256xf32, #tpu.memory_space<vmem>>, vector<1x4x256xf32>,
    return
  }
  func.func @transform_0(%arg0: i32) -> i32 {
    %c0_i32 = arith.constant 0 : i32
    %c0_i32_0 = arith.constant 0 : i32
    return %c0_i32 : i32
  }
  func.func @transform_1(%arg0: i32) -> (i32, i32) {
    %c0_i32 = arith.constant 0 : i32
    %c0_i32_0 = arith.constant 0 : i32
    %c0_i32_1 = arith.constant 0 : i32
    return %c0_i32, %c0_i32_0 : i32, i32
  }
  func.func @transform_2(%arg0: i32) -> (i32, i32, i32) {
    %c0_i32 = arith.constant 0 : i32
    %c0_i32_0 = arith.constant 0 : i32
    %c0_i32_1 = arith.constant 0 : i32
    return %arg0, %c0_i32, %c0_i32_0 : i32, i32, i32
  }
  func.func @transform_3(%arg0: i32) -> (i32, i32, i32) {
    %c0_i32 = arith.constant 0 : i32
    %c0_i32_0 = arith.constant 0 : i32
    %c0_i32_1 = arith.constant 0 : i32
    return %arg0, %c0_i32, %c0_i32_0 : i32, i32, i32
  }
}

</mosaic_0001>

<bundles_post_ra>
// kernel: tpu_custom_call.1
= control target key start
LH: loop header
LB: loop body
LE: loop exit
PB: predicated region body
PF: predicated region fallthrough
CT: control target
= control target key end

     0   :  { %8 = vsyncpa [#allocation6], 0  ;;  %s2536_s0 = inlined_call_operand.hbm [shape: f32[98], index: 0, kind: input, shape index: {}]   ;;  %s2537_s1 = inlined_call_operand.vmem [shape: s32[1,256], index: 1, kind: input, shape index: {}]   ;;  %s2538_s2 = inlined_call_operand.hbm [shape: f32[2,4,256], index: 2, kind: input, shape index: {}]   ;;  %s2539_s3 = inlined_call_operand.hbm [shape: f32[2,4,256], index: 3, kind: output, shape index: {}]  }
   0x1   :  { %9 = vsyncpa [#allocation4], 0 }
   0x2   :  { %11 = vsyncpa [#allocation4 + $0x1], 0 }
   0x3   :  { %12 = vsyncpa [#allocation5], 0 }
   0x4   :  { %14 = vsyncpa [#allocation5 + $0x1], 0  ;;  %s1760_s12 = smov 0   ;;  %s1762_s13 = smov 0  }
   0x5   :  { %s1764_s14 = smov 0   ;;  %s1766_s15 = smov 0  }
   0x6 LB: > { %s1781_s16 = sadd.s32 4294967295, %s1724_s15   ;;  %s1422_s17 = sadd.s32 4294967294, %s1724_s15   ;;  %s1724_s15 = sphi %s1766_s15, %s2578_s15   ;;  %s1720_s14 = sphi %s1764_s14, %s2577_s14   ;;  %s1716_s13 = sphi %s1762_s13, %s2576_s13   ;;  %s1712_s12 = sphi %s1760_s12, %s2575_s12  }
   0x7   : > { %p82_p0 = scmp.ne.s32.totalorder %s1716_s13, %s1712_s12  ;;  %p2540_p1 = scmp.eq.s32.totalorder %s1781_s16, 0 }
   0x8   : > { %p112_p3 = scmp.eq.s32.totalorder %s1422_s17, 1  ;;  %p1423_p5 = scmp.ge.s32.totalorder %s1724_s15, 1 }
   0x9   : > { %p1790_p4 = por %p2540_p1, %p82_p0  ;;  %p119_p7 = scmp.lt.s32.totalorder %s1724_s15, 3 }
   0xa   : > { %p1795_p6 = por %p112_p3, %p82_p0  ;;  %s1806_s21 = sadd.s32 1, %s1724_s15  }
   0xb   : > { %s2544_s18 = scalar_select %p1790_p4, 1, 0 }
   0xc   : > { %s2545_s19 = scalar_select %p1795_p6, 1, 0 }
   0xd   : > { %p1800_p8 = pnand %p1423_p5, %p119_p7  ;;  %s66_s22 = ssub.s32 %s1724_s15, %s1806_s21 }
   0xe   : > { %s69_s23 = sadd.s32 1, %s1720_s14  ;;  %p1819_p12 = scmp.eq.s32.totalorder %s66_s22, 0 }
   0xf   : > { %p1545_p10 = pneg %p1800_p8  ;;  %p76_p13 = scmp.ne.s32.totalorder %s1720_s14, %s1716_s13 }
  0x10   : > { %p77_p0 = scmp.eq.s32.totalorder %s1724_s15, 0  ;;  %p1558_p3 = scmp.lt.s32.totalorder %s1724_s15, 2 }
  0x11   : > { %p1815_p11 = pnand %p1545_p10, %p2540_p1  ;;  %s1611_s28 = scalar_lea.hbm %s2536_s0, 16 }
  0x12   : > { %p1612_p5 = scmp.ne.s32.totalorder %s2536_s0, %s1611_s28  ;;  %p1618_p1 = scmp.lt.u32.totalorder %s1611_s28, %s2536_s0 }
  0x13   : > { %p1613_p7 = pneg %p1815_p11 }
  0x15   : > { %p1614_p10 = pnand %p1613_p7, %p1612_p5 }
  0x17   : > { %p1615_p9 = pneg %p1614_p10 }
  0x19   : > { %p1620_p2 = pnand %p1618_p1, %p1615_p9 }
  0x1b   : > { %1623 = shalt.err (!%p1620_p2)
}
  0x1c   : > { %s1726_s6 = smov [#allocation3]   ;;  %p78_p1 = por %p77_p0, %p76_p13 }
  0x1d   : > { %1548 = dma.hbm_to_smem (!%p1815_p11), %s2536_s0, 16, %s1726_s6, [#allocation6]  }
  0x1e   : > { %s1846_s9 = scalar_select %p1819_p12, %s1720_s14, %s69_s23  }
  0x1f   : > { %p2549_p2 = scmp.eq.s32.totalorder %s1781_s16, 1  ;;  %s144_s11 = sand.u32 1, %s1720_s14  }
  0x20   : > { %s1535_s17 = sshll.u32 %s1724_s15, 7  ;;  %s1426_s22 = sshll.u32 %s144_s11, 3 }
  0x21   : > { %p1858_p9 = por %p2549_p2, %p76_p13  ;;  %s1867_s27 = scalar_lea.hbm %s2538_s2, %s1535_s17 }
  0x22   : > { %s148_s23 = scalar_lea.vmem [#allocation7], %s1426_s22  ;;  %p1871_p11 = pnand %p1558_p3, %p78_p1 }
  0x23   : > { %s2550_s10 = scalar_select %p1858_p9, 1, 0 }
  0x24   : > { %s156_s25 = sshll.u32 %s148_s23, 4  ;;  %s145_s29 = scalar_lea.sflag [#allocation4], %s144_s11  ;;  %s1875_s25 = int_to_ptr.vmem [resolvable:$true] %s156_s25 }
  0x25   : > { %s1624_s30 = scalar_lea.hbm %s1867_s27, 128  ;;  %p1626_p13 = pneg %p1871_p11 }
  0x26   : > { %p1625_p12 = scmp.ne.s32.totalorder %s1867_s27, %s1624_s30  ;;  %s1629_s6 = scalar_lea.hbm %s2538_s2, 256 }
  0x27   : > { %p1630_p3 = scmp.lt.u32.totalorder %s1867_s27, %s2538_s2  ;;  %p1631_p7 = scmp.lt.u32.totalorder %s1629_s6, %s1624_s30 }
  0x28   : > { %p1627_p0 = pnand %p1626_p13, %p1625_p12  ;;  %p1633_p1 = scmp.lt.u32.totalorder %s1624_s30, %s1867_s27 }
  0x29   : > { %p1632_p10 = por %p1631_p7, %p1630_p3 }
  0x2a   : > { %p1628_p5 = pneg %p1627_p0 }
  0x2b   : > { %p1634_p2 = por %p1633_p1, %p1632_p10 }
  0x2d   : > { %p1635_p6 = pnand %p1634_p2, %p1628_p5 }
  0x2f   : > { %1638 = shalt.err (!%p1635_p6)
}
  0x30   : > { %s1639_s11 = scalar_lea.vmem %s1875_s25, 128  ;;  %s1727_s17 = smov [#allocation7]  }
  0x31   : > { %p1640_p12 = scmp.ne.s32.totalorder %s1875_s25, %s1639_s11  ;;  %s1644_s22 = sshll.u32 %s1727_s17, 4  ;;  %s1645_s22 = int_to_ptr.vmem [resolvable:$false] %s1644_s22 }
  0x32   : > { %s1646_s24 = scalar_lea.vmem %s1645_s22, 256  ;;  %p1647_p4 = scmp.lt.s32.totalorder %s1875_s25, %s1645_s22 }
  0x33   : > { %p1642_p0 = pnand %p1640_p12, %p1626_p13  ;;  %p1648_p3 = scmp.lt.s32.totalorder %s1646_s24, %s1639_s11 }
  0x35   : > { %p1643_p9 = pneg %p1642_p0  ;;  %p1649_p7 = por %p1648_p3, %p1647_p4 }
  0x37   : > { %p1650_p10 = pnand %p1649_p7, %p1643_p9 }
  0x39   : > { %1653 = shalt.err (!%p1650_p10)
}
  0x3a   : > { %1552 = dma.hbm_to_vmem [thread:$0]  (!%p1871_p11), %s1867_s27, 128, %s1875_s25, %s145_s29  }
  0x3b   : > { %165 = sbr.rel (%p1800_p8) target bundleno = 803 (0x323), region = 32  ;;  %p2552_p6 = scmp.eq.s32.totalorder (!%p1800_p8), %s1781_s16, 0 }
  0x42   : > { %1699 = dma.done.wait (%p2552_p6), [#allocation6], 16   ;;  %p2553_p13 = pmov %p2552_p6 }
  0x43   : > { %s1909_s26 = sand.u32 1, %s1716_s13   ;;  %p2554_p4 = scmp.ne.s32.totalorder %s2544_s18, 0 }
  0x44   : > { %1701 = vsyncadd (%p2553_p13), [#allocation6], 4294967280  ;;  %s1431_s23 = sshll.u32 %s1909_s26, 3  ;;  %s172_s28 = scalar_lea.sflag [#allocation4], %s1909_s26 }
  0x45   : > { %s1915_s27 = scalar_lea.vmem [#allocation7], %s1431_s23 }
  0x46   : > { %1703 = dma.done.wait (%p2554_p4), %s172_s28, 128  }
  0x47   : > { %1705 = vsyncadd (%p2554_p4), %s172_s28, 4294967168 }
  0x48   : > { %180 = sfence }
  0x49   : > { %v199_v0 = vld [vmem:[%s1915_s27] sm:$0xff]  ;;  %vm203_vm0 = vcmask 1043456   ;;  %vm234_vm1 = vcmask 516096   ;;  %vm236_vm2 = vcmask 1040896   ;;  %v1728_v8 = vmov 0.0   ;;  %s1730_s18 = smov 64  }
  0x4a   : > { %v201_v1 = vcombine.high %v199_v0, %v199_v0  ;;  %v218_v2 = vsel %vm203_vm0, %v199_v0, -inf  ;;  %v204_v3 = vsel %vm203_vm0, %v199_v0, 0.0  ;;  %266 = vst.msk [vmem:[#allocation2 + $0x1] sm:$0x1] %vm234_vm1, %v1728_v8  ;;  %235 = vst.msk [vmem:[#allocation2] sm:$0x1] %vm234_vm1, %v1728_v8  ;;  %v244_v15 = vlaneseq }
  0x4b   : > { %v219_v4 = vrot.slane %v218_v2, 4  ;;  %v205_v5 = vrot.slane %v204_v3, 4  ;;  %267 = vst.msk [vmem:[#allocation2 + $0x5] sm:$0x1] %vm236_vm2, %v1728_v8  ;;  %237 = vst.msk [vmem:[#allocation2 + $0x4] sm:$0x1] %vm236_vm2, %v1728_v8 }
  0x4c   : > { %v225_v6 = vsel %vm203_vm0, %v201_v1, -inf  ;;  %v211_v7 = vsel %vm203_vm0, %v201_v1, 0.0  ;;  %v1729_v13 = vmov 1966171168   ;;  %v1922_v25 = vshrl.u32 %v244_v15, 7  ;;  %s1481_s20 = sld [smem:[#allocation3 + $0x31]] }
  0x4d   : > { %v220_v9 = vmax.f32 %v218_v2, %v219_v4  ;;  %v226_v10 = vrot.slane %v225_v6, 4  ;;  %v206_v11 = vadd.f32 %v205_v5, %v204_v3  ;;  %v212_v12 = vrot.slane %v211_v7, 4  ;;  %s1482_s25 = sld [smem:[#allocation3 + $0x32]]  ;;  %s1509_s29 = sld [smem:[#allocation3 + $0x4d]] }
  0x4e   : > { %v242_v14 = vunpack.c.l.s4 %v1729_v13  ;;  %vm1927_vm3 = vcmp.ge.s32.totalorder %v244_v15, 64  ;;  %vm263_vm4 = vcmp.lt.s32.totalorder %v244_v15, 320  ;;  %vm258_vm5 = vcmask 523264   ;;  %s1483_s30 = sld [smem:[#allocation3 + $0x33]]  ;;  %s1510_s4 = sld [smem:[#allocation3 + $0x4e]] }
  0x4f   : > { %v221_v16 = vrot.slane %v220_v9, 2  ;;  %v227_v17 = vmax.f32 %v225_v6, %v226_v10  ;;  %v207_v18 = vrot.slane %v206_v11, 2  ;;  %v213_v19 = vadd.f32 %v212_v12, %v211_v7  ;;  %vm264_vm6 = vmand %vm1927_vm3, %vm263_vm4  ;;  %s1485_s5 = sld [smem:[#allocation3 + $0x35]]  ;;  %s1511_s6 = sld [smem:[#allocation3 + $0x4f]] }
  0x50   : > { %v243_v24 = vunpack.c.0.s8 %v242_v14  ;;  %s1486_s7 = sld [smem:[#allocation3 + $0x36]]  ;;  %s1731_s8 = smov 96   ;;  %vm447_vm7 = vcmask 785408   ;;  %vm2543_vm8 = vcmask 916480   ;;  %vm651_vm1 = vcmask 932864  }
  0x51   : > { %v222_v20 = vmax.f32 %v220_v9, %v221_v16  ;;  %v228_v21 = vrot.slane %v227_v17, 2  ;;  %v208_v22 = vadd.f32 %v207_v18, %v206_v11  ;;  %v214_v23 = vrot.slane %v213_v19, 2  ;;  %s1513_s11 = sld [smem:[#allocation3 + $0x51]]  ;;  %s1484_s17 = sld [smem:[#allocation3 + $0x34]] }
  0x52   : > { %v246_v35 = vsub.s32 %v243_v24, %v1922_v25  ;;  %v407_v52 = vstv %s1481_s20  ;;  %s1732_s22 = smov 112   ;;  %s1514_s24 = sld [smem:[#allocation3 + $0x52]]  ;;  %vm1160_vm4 = vcmask 900096  }
  0x53   : > { %v223_v26 = vrot.slane %v222_v20, 1  ;;  %v229_v27 = vmax.f32 %v227_v17, %v228_v21  ;;  %v209_v28 = vrot.slane %v208_v22, 1  ;;  %v215_v29 = vadd.f32 %v214_v23, %v213_v19  ;;  %s1523_s28 = sld [smem:[#allocation3 + $0x5b]]  ;;  %s1512_s20 = sld [smem:[#allocation3 + $0x50]] }
  0x54   : > { %v539_v53 = vstv %s1482_s25  ;;  %v415_v57 = vstv %s1509_s29  ;;  %v669_v58 = vstv %s1483_s30  ;;  %v547_v61 = vstv %s1510_s4  ;;  %s1525_s25 = sld [smem:[#allocation3 + $0x5d]]  ;;  %s1524_s29 = sld [smem:[#allocation3 + $0x5c]] }
  0x55   : > { %v224_v30 = vmax.f32 %v222_v20, %v223_v26  ;;  %v230_v31 = vrot.slane %v229_v27, 1  ;;  %v210_v32 = vadd.f32 %v209_v28, %v208_v22  ;;  %v216_v33 = vrot.slane %v215_v29, 1  ;;  %s1528_s30 = sld [smem:[#allocation3 + $0x60]]  ;;  %s1527_s4 = sld [smem:[#allocation3 + $0x5f]] }
  0x56   : > { %v918_v62 = vstv %s1485_s5  ;;  %v677_v1 = vstv %s1511_s6  ;;  %v1048_v2 = vstv %s1486_s7  ;;  %s1515_s5 = sld [smem:[#allocation3 + $0x53]]  ;;  %s1487_s6 = sld [smem:[#allocation3 + $0x37]] }
  0x57   : > { %v231_v34 = vmax.f32 %v229_v27, %v230_v31  ;;  %v217_v36 = vadd.f32 %v216_v33, %v215_v29  ;;  %v232_v37 = vmul.f32 0.25, %v210_v32  ;;  %v926_v5 = vstv %s1513_s11  ;;  %s1529_s7 = sld [smem:[#allocation3 + $0x61]]  ;;  %s1526_s11 = sld [smem:[#allocation3 + $0x5e]] }
  0x58   : > { %v799_v6 = vstv %s1484_s17  ;;  %v1056_v9 = vstv %s1514_s24  ;;  %s1496_s17 = sld [smem:[#allocation3 + $0x40]]  ;;  %s1495_s24 = sld [smem:[#allocation3 + $0x3f]] }
  0x59   : > { %v270_v38 = vcombine.low %v224_v30, %v231_v34  ;;  %v233_v39 = vmul.f32 0.25, %v217_v36  ;;  %v419_v10 = vstv %s1523_s28  ;;  %v807_v13 = vstv %s1512_s20  ;;  %s1499_s28 = sld [smem:[#allocation3 + $0x43]]  ;;  %s1497_s20 = sld [smem:[#allocation3 + $0x41]] }
  0x5a   : > { %v681_v14 = vstv %s1525_s25  ;;  %v551_v17 = vstv %s1524_s29  ;;  %s1498_s25 = sld [smem:[#allocation3 + $0x42]]  ;;  %s1467_s29 = sld [smem:[#allocation3 + $0x23]] }
  0x5b   : > { %v277_v40 = vrot.slane %v270_v38, %v246_v35  ;;  %v240_v41 = vcombine.low %v232_v37, %v233_v39  ;;  %v1060_v18 = vstv %s1528_s30  ;;  %v930_v21 = vstv %s1527_s4  ;;  %s1500_s30 = sld [smem:[#allocation3 + $0x44]]  ;;  %s1454_s4 = sld [smem:[#allocation3 + $0x16]] }
  0x5c   : > { %v1186_v22 = vstv %s1515_s5  ;;  %v1178_v26 = vstv %s1487_s6  ;;  %s1501_s5 = sld [smem:[#allocation3 + $0x45]]  ;;  %p2572_p9 = scmp.ne.s32.totalorder %s2550_s10, 0 }
  0x5d   : > { %v284_v42 = vrot.slane %v277_v40, %v246_v35  ;;  %v247_v43 = vrot.slane %v240_v41, %v246_v35  ;;  %v1190_v27 = vstv %s1529_s7  ;;  %v811_v30 = vstv %s1526_s11  ;;  %s1469_s6 = sld [smem:[#allocation3 + $0x25]]  ;;  %s1457_s11 = sld [smem:[#allocation3 + $0x19]] }
  0x5e   : > { %v543_v31 = vstv %s1496_s17  ;;  %v411_v34 = vstv %s1495_s24  ;;  %s1453_s7 = sld [smem:[#allocation3 + $0x15]]  ;;  %s1468_s17 = sld [smem:[#allocation3 + $0x24]] }
  0x5f   : > { %285 = vrot.lane.b32.xlu0 %v284_v42, %s1730_s18  ;;  %v254_v44 = vrot.slane %v247_v43, %v246_v35  ;;  %v922_v35 = vstv %s1499_s28  ;;  %v673_v38 = vstv %s1497_s20  ;;  %s1472_s24 = sld [smem:[#allocation3 + $0x28]]  ;;  %s1455_s28 = sld [smem:[#allocation3 + $0x17]] }
  0x60   : > { %v803_v39 = vstv %s1498_s25  ;;  %v402_v41 = vstv %s1467_s29  ;;  %s1456_s20 = sld [smem:[#allocation3 + $0x18]]  ;;  %s1471_s25 = sld [smem:[#allocation3 + $0x27]] }
  0x61   : > { %s1473_s29 = sld [smem:[#allocation3 + $0x29]] }
  0x63   : > { %255 = vrot.lane.b32.xlu0 %v254_v44, %s1730_s18  ;;  %v1052_v44 = vstv %s1500_s30  ;;  %s1458_s30 = sld [smem:[#allocation3 + $0x1a]] }
  0xd1   : > { %v286_v46 = vpop.permute.xlu0 %285 }
  0xd2   : > { %v287_v47 = vrot.slane %v286_v46, 7 }
  0xd4   : > { %v288_v48 = vsel %vm258_vm5, %v287_v47, %v286_v46  ;;  %v531_v46 = vstv %s1454_s4  ;;  %s1470_s4 = sld [smem:[#allocation3 + $0x26]] }
  0xd5   : > { %291 = vst.msk [vmem:[#allocation2 + $0x1] ss:$2 sm:$0x7] %vm264_vm6, %v288_v48  ;;  %v256_v49 = vpop.permute.xlu0 %255  ;;  %v1182_v48 = vstv %s1501_s5  ;;  %s1459_s5 = sld [smem:[#allocation3 + $0x1b]] }
  0xd6   : > { %v257_v50 = vrot.slane %v256_v49, 7 }
  0xd8   : > { %v259_v51 = vsel %vm258_vm5, %v257_v50, %v256_v49  ;;  %v665_v50 = vstv %s1469_s6  ;;  %s1474_s6 = sld [smem:[#allocation3 + $0x2a]] }
  0xd9   : > { %265 = vst.msk [vmem:[#allocation2] ss:$2 sm:$0x7] %vm264_vm6, %v259_v51  ;;  %v398_v51 = vstv %s1453_s7  ;;  %s1475_s7 = sld [smem:[#allocation3 + $0x2b]] }
  0xdc   : > { %v1935_v54 = vld [vmem:[#allocation2 + $0x1] ss:$2 sm:$0x7] }
  0xdd   : > { %v408_v55 = vmul.f32 %v407_v52, %v1935_v54  ;;  %v540_v56 = vmul.f32 %v539_v53, %v1935_v54  ;;  %v416_v59 = vmul.f32 %v415_v57, %v1935_v54  ;;  %v670_v60 = vmul.f32 %v669_v58, %v1935_v54 }
  0xde   : > { %v548_v63 = vmul.f32 %v547_v61, %v1935_v54  ;;  %v919_v0 = vmul.f32 %v918_v62, %v1935_v54  ;;  %v678_v3 = vmul.f32 %v677_v1, %v1935_v54  ;;  %v1049_v4 = vmul.f32 %v1048_v2, %v1935_v54 }
  0xdf   : > { %444 = vrot.lane.b32.xlu1 %v408_v55, %s1731_s8  ;;  %575 = vrot.lane.b32.xlu0 %v540_v56, %s1731_s8  ;;  %v927_v7 = vmul.f32 %v926_v5, %v1935_v54  ;;  %v800_v8 = vmul.f32 %v799_v6, %v1935_v54  ;;  %v1057_v11 = vmul.f32 %v1056_v9, %v1935_v54  ;;  %v910_v56 = vstv %s1457_s11  ;;  %s1502_s11 = sld [smem:[#allocation3 + $0x46]] }
  0xe0   : > { %v420_v12 = vmul.f32 %v419_v10, %v1935_v54  ;;  %v808_v15 = vmul.f32 %v807_v13, %v1935_v54  ;;  %v682_v16 = vmul.f32 %v681_v14, %v1935_v54  ;;  %v552_v19 = vmul.f32 %v551_v17, %v1935_v54  ;;  %v1985_v40 = vld [vmem:[#allocation2] ss:$2 sm:$0x7] }
  0xe1   : > { %v1061_v20 = vmul.f32 %v1060_v18, %v1935_v54  ;;  %v931_v23 = vmul.f32 %v930_v21, %v1935_v54  ;;  %v1187_v24 = vmul.f32 %v1186_v22, %v1935_v54  ;;  %v1179_v28 = vmul.f32 %v1178_v26, %v1935_v54 }
  0xe2   : > { %v1191_v29 = vmul.f32 %v1190_v27, %v1935_v54  ;;  %v812_v32 = vmul.f32 %v811_v30, %v1935_v54  ;;  %v544_v33 = vmul.f32 %v543_v31, %v1935_v54  ;;  %v412_v36 = vmul.f32 %v411_v34, %v1935_v54 }
  0xe3   : > { %459 = vrot.lane.b32.xlu1 %v416_v59, %s1732_s22  ;;  %705 = vrot.lane.b32.xlu0 %v670_v60, %s1731_s8  ;;  %v923_v37 = vmul.f32 %v922_v35, %v1935_v54  ;;  %v674_v42 = vmul.f32 %v673_v38, %v1935_v54  ;;  %v804_v43 = vmul.f32 %v803_v39, %v1935_v54  ;;  %v535_v57 = vstv %s1468_s17  ;;  %s2023_s17 = sld [smem:[#allocation3 + $0x2c]] }
  0xe4   : > { %v403_v45 = vmul.f32 %v402_v41, %v1985_v40  ;;  %v1053_v47 = vmul.f32 %v1052_v44, %v1935_v54  ;;  %v532_v49 = vmul.f32 %v531_v46, %v1985_v40  ;;  %v1183_v52 = vmul.f32 %v1182_v48, %v1935_v54 }
  0xe5   : > { %v666_v53 = vmul.f32 %v665_v50, %v1985_v40  ;;  %v399_v55 = vmul.f32 %v398_v51, %v1985_v40  ;;  %v911_v58 = vmul.f32 %v910_v56, %v1985_v40  ;;  %v536_v59 = vmul.f32 %v535_v57, %v1985_v40 }
  0xe6   : > { %v1044_v60 = vstv %s1472_s24  ;;  %v661_v61 = vstv %s1455_s28  ;;  %v914_v1 = vstv %s1471_s25  ;;  %v1040_v5 = vstv %s1458_s30  ;;  %s2025_s24 = sld [smem:[#allocation3 + $0x47]]  ;;  %s2029_s28 = sld [smem:[#allocation3 + $0x2e]] }
  0xe7   : > { %589 = vrot.lane.b32.xlu1 %v548_v63, %s1732_s22  ;;  %954 = vrot.lane.b32.xlu0 %v919_v0, %s1731_s8  ;;  %v1045_v62 = vmul.f32 %v1044_v60, %v1985_v40  ;;  %v662_v63 = vmul.f32 %v661_v61, %v1985_v40  ;;  %v791_v0 = vstv %s1456_s20  ;;  %v1170_v10 = vstv %s1459_s5  ;;  %s2031_s20 = sld [smem:[#allocation3 + $0x48]]  ;;  %s2040_s25 = sld [smem:[#allocation3 + $0x2f]] }
  0xe8   : > { %v792_v2 = vmul.f32 %v791_v0, %v1985_v40  ;;  %s2052_s30 = sld [smem:[#allocation3 + $0x4b]]  ;;  %s2064_s5 = sld [smem:[#allocation3 + $0x49]] }
  0xe9   : > { %v667_v31 = vstv %s2023_s17  ;;  %s2085_s17 = sld [smem:[#allocation3 + $0x58]] }
  0xea   : > { %v668_v41 = vmul.f32 %v667_v31, %v1985_v40 }
  0xeb   : > { %719 = vrot.lane.b32.xlu1 %v678_v3, %s1732_s22  ;;  %1084 = vrot.lane.b32.xlu0 %v1049_v4, %s1731_s8  ;;  %v915_v3 = vmul.f32 %v914_v1, %v1985_v40  ;;  %v1174_v4 = vstv %s1473_s29  ;;  %s2042_s29 = sld [smem:[#allocation3 + $0x4a]] }
  0xec   : > { %v1175_v6 = vmul.f32 %v1174_v4, %v1985_v40  ;;  %v916_v44 = vstv %s2029_s28  ;;  %s2096_s28 = sld [smem:[#allocation3 + $0x30]] }
  0xed   : > { %v1046_v57 = vstv %s2040_s25  ;;  %s2108_s25 = sld [smem:[#allocation3 + $0x57]] }
  0xee   : > { %v1047_v1 = vmul.f32 %v1046_v57, %v1985_v40  ;;  %v1054_v4 = vstv %s2052_s30  ;;  %s2117_s30 = sld [smem:[#allocation3 + $0x5a]] }
  0xef   : > { %968 = vrot.lane.b32.xlu1 %v927_v7, %s1732_s22  ;;  %835 = vrot.lane.b32.xlu0 %v800_v8, %s1731_s8  ;;  %v1041_v7 = vmul.f32 %v1040_v5, %v1985_v40  ;;  %v795_v8 = vstv %s1470_s4  ;;  %s2062_s4 = sld [smem:[#allocation3 + $0x2d]] }
  0xf0   : > { %v796_v9 = vmul.f32 %v795_v8, %v1985_v40 }
  0xf3   : > { %1098 = vrot.lane.b32.xlu1 %v1057_v11, %s1732_s22  ;;  %466 = vrot.lane.b32.xlu0 %v420_v12, %s1732_s22  ;;  %v1171_v11 = vmul.f32 %v1170_v10, %v1985_v40  ;;  %v404_v12 = vstv %s1474_s6  ;;  %s2073_s6 = sld [smem:[#allocation3 + $0x54]] }
  0xf4   : > { %v405_v17 = vmul.f32 %v404_v12, %v1985_v40 }
  0xf5   : > { %v797_v12 = vstv %s2062_s4  ;;  %s2122_s4 = sld [smem:[#allocation3 + $0x38]] }
  0xf7   : > { %849 = vrot.lane.b32.xlu1 %v808_v15, %s1732_s22  ;;  %726 = vrot.lane.b32.xlu0 %v682_v16, %s1732_s22 }
  0xfb   : > { %596 = vrot.lane.b32.xlu1 %v552_v19, %s1732_s22  ;;  %1105 = vrot.lane.b32.xlu0 %v1061_v20, %s1732_s22  ;;  %v537_v19 = vstv %s1475_s7  ;;  %v413_v20 = vstv %s1502_s11  ;;  %s2075_s7 = sld [smem:[#allocation3 + $0x55]]  ;;  %s2083_s11 = sld [smem:[#allocation3 + $0x56]] }
  0xff   : > { %975 = vrot.lane.b32.xlu1 %v931_v23, %s1732_s22  ;;  %1228 = vrot.lane.b32.xlu0 %v1187_v24, %s1732_s22 }
 0x103   : > { %1214 = vrot.lane.b32.xlu1 %v1179_v28, %s1731_s8  ;;  %1235 = vrot.lane.b32.xlu0 %v1191_v29, %s1732_s22  ;;  %v538_v28 = vmul.f32 %v537_v19, %v1985_v40  ;;  %v414_v29 = vmul.f32 %v413_v20, %v1935_v54 }
 0x107   : > { %856 = vrot.lane.b32.xlu1 %v812_v32, %s1732_s22  ;;  %582 = vrot.lane.b32.xlu0 %v544_v33, %s1732_s22  ;;  %v545_v32 = vstv %s2025_s24  ;;  %s2094_s24 = sld [smem:[#allocation3 + $0x59]] }
 0x10b   : > { %452 = vrot.lane.b32.xlu1 %v412_v36, %s1732_s22  ;;  %961 = vrot.lane.b32.xlu0 %v923_v37, %s1732_s22 }
 0x10f   : > { %712 = vrot.lane.b32.xlu1 %v674_v42, %s1732_s22  ;;  %842 = vrot.lane.b32.xlu0 %v804_v43, %s1732_s22  ;;  %v546_v42 = vmul.f32 %v545_v32, %v1935_v54 }
 0x113   : > { %1091 = vrot.lane.b32.xlu1 %v1053_v47, %s1732_s22  ;;  %437 = vrot.lane.b32.xlu0 %v403_v45, %s1732_s22  ;;  %v675_v45 = vstv %s2031_s20  ;;  %s2103_s20 = sld [smem:[#allocation3 + $0x4c]] }
 0x117   : > { %1221 = vrot.lane.b32.xlu1 %v1183_v52, %s1732_s22  ;;  %561 = vrot.lane.b32.xlu0 %v532_v49, %s1732_s22 }
 0x11b   : > { %698 = vrot.lane.b32.xlu0 %v666_v53, %s1732_s22  ;;  %430 = vrot.lane.b32.xlu1 %v399_v55, %s1732_s22  ;;  %v917_v53 = vmul.f32 %v916_v44, %v1985_v40  ;;  %v676_v55 = vmul.f32 %v675_v45, %v1935_v54 }
 0x11f   : > { %940 = vrot.lane.b32.xlu0 %v911_v58, %s1732_s22  ;;  %568 = vrot.lane.b32.xlu1 %v536_v59, %s1732_s22  ;;  %v924_v58 = vstv %s2042_s29  ;;  %s2110_s29 = sld [smem:[#allocation3 + $0x39]] }
 0x123   : > { %1077 = vrot.lane.b32.xlu0 %v1045_v62, %s1732_s22  ;;  %691 = vrot.lane.b32.xlu1 %v662_v63, %s1732_s22 }
 0x127   : > { %821 = vrot.lane.b32.xlu0 %v792_v2, %s1732_s22  ;;  %947 = vrot.lane.b32.xlu1 %v915_v3, %s1732_s22  ;;  %v925_v2 = vmul.f32 %v924_v58, %v1935_v54 }
 0x12b   : > { %1207 = vrot.lane.b32.xlu0 %v1175_v6, %s1732_s22  ;;  %1070 = vrot.lane.b32.xlu1 %v1041_v7, %s1732_s22 }
 0x12f   : > { %828 = vrot.lane.b32.xlu1 %v796_v9, %s1732_s22 }
 0x133   : > { %1200 = vrot.lane.b32.xlu1 %v1171_v11, %s1732_s22  ;;  %v1055_v11 = vmul.f32 %v1054_v4, %v1935_v54 }
 0x151   : > { %v445_v13 = vpop.permute.xlu1 %444  ;;  %v576_v14 = vpop.permute.xlu0 %575 }
 0x152   : > { %v446_v15 = vrot.slane %v445_v13, 7  ;;  %v577_v16 = vrot.slane %v576_v14, 7 }
 0x154   : > { %v448_v18 = vsel %vm447_vm7, %v446_v15, %v445_v13  ;;  %v578_v24 = vsel %vm447_vm7, %v577_v16, %v576_v14  ;;  %v805_v14 = vstv %s2064_s5  ;;  %s2124_s5 = sld [smem:[#allocation3 + $0x3c]] }
 0x155   : > { %v460_v21 = vpop.permute.xlu1 %459  ;;  %v706_v22 = vpop.permute.xlu0 %705  ;;  %v450_v23 = vadd.f32 %v448_v18, %v405_v17  ;;  %v580_v33 = vadd.f32 %v578_v24, %v538_v28 }
 0x156   : > { %v461_v26 = vrot.slane %v460_v21, 1  ;;  %v707_v27 = vrot.slane %v706_v22, 7 }
 0x157   : > { %480 = vrot.lane.b32.xlu1 %v450_v23, %s1731_s8  ;;  %v417_v23 = vstv %s2073_s6  ;;  %s2127_s6 = sld [smem:[#allocation3 + $0x7]] }
 0x158   : > { %v462_v30 = vsel %vm2543_vm8, %v460_v21, %v461_v26  ;;  %v708_v37 = vsel %vm447_vm7, %v707_v27, %v706_v22  ;;  %v798_v21 = vmul.f32 %v797_v12, %v1985_v40  ;;  %v806_v22 = vmul.f32 %v805_v14, %v1935_v54 }
 0x159   : > { %v464_v34 = vadd.f32 %v462_v30, %v414_v29  ;;  %v590_v35 = vpop.permute.xlu1 %589  ;;  %v955_v36 = vpop.permute.xlu0 %954  ;;  %v710_v46 = vadd.f32 %v708_v37, %v668_v41  ;;  %v549_v26 = vstv %s2075_s7  ;;  %s2137_s7 = sld [smem:[#allocation3 + $0x3a]] }
 0x15a   : > { %v591_v38 = vrot.slane %v590_v35, 1  ;;  %v956_v39 = vrot.slane %v955_v36, 7 }
 0x15b   : > { %487 = vrot.lane.b32.xlu0 %v464_v34, %s1731_s8  ;;  %610 = vrot.lane.b32.xlu1 %v580_v33, %s1731_s8  ;;  %v418_v34 = vmul.f32 %v417_v23, %v1935_v54 }
 0x15c   : > { %v592_v43 = vsel %vm2543_vm8, %v590_v35, %v591_v38  ;;  %v957_v50 = vsel %vm447_vm7, %v956_v39, %v955_v36  ;;  %v550_v35 = vmul.f32 %v549_v26, %v1935_v54  ;;  %v679_v36 = vstv %s2083_s11  ;;  %s2139_s11 = sld [smem:[#allocation3 + $0x3b]] }
 0x15d   : > { %v594_v47 = vadd.f32 %v592_v43, %v546_v42  ;;  %v720_v48 = vpop.permute.xlu1 %719  ;;  %v1085_v49 = vpop.permute.xlu0 %1084  ;;  %v959_v59 = vadd.f32 %v957_v50, %v917_v53  ;;  %v928_v38 = vstv %s2085_s17  ;;  %s2141_s17 = sld [smem:[#allocation3 + $0x9]] }
 0x15e   : > { %v721_v51 = vrot.slane %v720_v48, 1  ;;  %v1086_v52 = vrot.slane %v1085_v49, 7 }
 0x15f   : > { %617 = vrot.lane.b32.xlu0 %v594_v47, %s1731_s8  ;;  %740 = vrot.lane.b32.xlu1 %v710_v46, %s1731_s8  ;;  %v680_v47 = vmul.f32 %v679_v36, %v1935_v54 }
 0x160   : > { %v722_v56 = vsel %vm2543_vm8, %v720_v48, %v721_v51  ;;  %v1087_v63 = vsel %vm447_vm7, %v1086_v52, %v1085_v49  ;;  %v929_v48 = vmul.f32 %v928_v38, %v1935_v54  ;;  %v1058_v49 = vstv %s2094_s24  ;;  %s2144_s24 = sld [smem:[#allocation3 + $0x8]] }
 0x161   : > { %v724_v60 = vadd.f32 %v722_v56, %v676_v55  ;;  %v969_v61 = vpop.permute.xlu1 %968  ;;  %v836_v62 = vpop.permute.xlu0 %835  ;;  %v1089_v5 = vadd.f32 %v1087_v63, %v1047_v1  ;;  %v1176_v51 = vstv %s2096_s28  ;;  %v541_v1 = vstv %s2110_s29  ;;  %s2156_s28 = sld [smem:[#allocation3 + $0x3d]]  ;;  %s2166_s29 = sld [smem:[#allocation3 + $0xb]] }
 0x162   : > { %v970_v0 = vrot.slane %v969_v61, 1  ;;  %v837_v9 = vrot.slane %v836_v62, 7 }
 0x163   : > { %747 = vrot.lane.b32.xlu0 %v724_v60, %s1731_s8  ;;  %989 = vrot.lane.b32.xlu1 %v959_v59, %s1731_s8  ;;  %v1059_v60 = vmul.f32 %v1058_v49, %v1935_v54 }
 0x164   : > { %v971_v3 = vsel %vm2543_vm8, %v969_v61, %v970_v0  ;;  %v838_v18 = vsel %vm447_vm7, %v837_v9, %v836_v62  ;;  %v1177_v61 = vmul.f32 %v1176_v51, %v1985_v40  ;;  %v1184_v62 = vstv %s2103_s20  ;;  %s2158_s20 = sld [smem:[#allocation3 + $0x1c]] }
 0x165   : > { %v973_v6 = vadd.f32 %v971_v3, %v925_v2  ;;  %v1099_v7 = vpop.permute.xlu1 %1098  ;;  %v467_v8 = vpop.permute.xlu0 %466  ;;  %v840_v27 = vadd.f32 %v838_v18, %v798_v21  ;;  %v809_v0 = vstv %s2108_s25  ;;  %s2164_s25 = sld [smem:[#allocation3 + $0xc]] }
 0x166   : > { %v1100_v10 = vrot.slane %v1099_v7, 1  ;;  %v468_v19 = vrot.slane %v467_v8, 1  ;;  %v810_v12 = vmul.f32 %v809_v0, %v1935_v54 }
 0x167   : > { %996 = vrot.lane.b32.xlu0 %v973_v6, %s1731_s8  ;;  %1119 = vrot.lane.b32.xlu1 %v1089_v5, %s1731_s8 }
 0x168   : > { %v1101_v13 = vsel %vm2543_vm8, %v1099_v7, %v1100_v10  ;;  %v469_v31 = vsel %vm2543_vm8, %v467_v8, %v468_v19  ;;  %v1185_v10 = vmul.f32 %v1184_v62, %v1935_v54  ;;  %v906_v62 = vstv %s2166_s29  ;;  %s1452_s29 = sld [smem:[#allocation3 + $0x14]] }
 0x169   : > { %v1103_v15 = vadd.f32 %v1101_v13, %v1055_v11  ;;  %v850_v16 = vpop.permute.xlu1 %849  ;;  %v727_v17 = vpop.permute.xlu0 %726  ;;  %v471_v39 = vadd.f32 %v469_v31, %v418_v34  ;;  %v1188_v11 = vstv %s2117_s30  ;;  %v542_v13 = vmul.f32 %v541_v1, %v1935_v54  ;;  %s2177_s30 = sld [smem:[#allocation3 + $0x3e]] }
 0x16a   : > { %v851_v20 = vrot.slane %v850_v16, 1  ;;  %v728_v32 = vrot.slane %v727_v17, 1  ;;  %v801_v34 = vstv %s2139_s11  ;;  %v400_v51 = vstv %s2158_s20  ;;  %s2217_s11 = sld [smem:[#allocation3 + $0xf]]  ;;  %s1449_s20 = sld [smem:[#allocation3 + $0x11]] }
 0x16b   : > { %1126 = vrot.lane.b32.xlu0 %v1103_v15, %s1731_s8  ;;  %v401_v0 = vmul.f32 %v400_v51, %v1985_v40 }
 0x16c   : > { %v852_v24 = vsel %vm2543_vm8, %v850_v16, %v851_v20  ;;  %v729_v44 = vsel %vm2543_vm8, %v727_v17, %v728_v32  ;;  %v409_v16 = vstv %s2122_s4  ;;  %v920_v17 = vstv %s2124_s5  ;;  %s2186_s4 = sld [smem:[#allocation3 + $0xa]]  ;;  %s2196_s5 = sld [smem:[#allocation3 + $0xe]] }
 0x16d   : > { %v854_v28 = vadd.f32 %v852_v24, %v806_v22  ;;  %v597_v29 = vpop.permute.xlu1 %596  ;;  %v1106_v30 = vpop.permute.xlu0 %1105  ;;  %v731_v52 = vadd.f32 %v729_v44, %v680_v47  ;;  %v657_v44 = vstv %s2141_s17  ;;  %v802_v47 = vmul.f32 %v801_v34, %v1935_v54  ;;  %s2232_s17 = sld [smem:[#allocation3 + $0x12]] }
 0x16e   : > { %v598_v33 = vrot.slane %v597_v29, 1  ;;  %v1107_v45 = vrot.slane %v1106_v30, 1 }
 0x16f   : > { %877 = vrot.lane.b32.xlu1 %v854_v28, %s1731_s8  ;;  %870 = vrot.lane.b32.xlu0 %v840_v27, %s1731_s8  ;;  %v394_v27 = vstv %s2127_s6  ;;  %v1189_v28 = vmul.f32 %v1188_v11, %v1935_v54  ;;  %s2198_s6 = sld [smem:[#allocation3 + $0x1e]] }
 0x170   : > { %v599_v37 = vsel %vm2543_vm8, %v597_v29, %v598_v33  ;;  %v1108_v57 = vsel %vm2543_vm8, %v1106_v30, %v1107_v45  ;;  %v410_v29 = vmul.f32 %v409_v16, %v1935_v54  ;;  %v921_v30 = vmul.f32 %v920_v17, %v1935_v54 }
 0x171   : > { %v601_v41 = vadd.f32 %v599_v37, %v550_v35  ;;  %v976_v42 = vpop.permute.xlu1 %975  ;;  %v1229_v43 = vpop.permute.xlu0 %1228  ;;  %v1110_v2 = vadd.f32 %v1108_v57, %v1059_v60  ;;  %v671_v33 = vstv %s2137_s7  ;;  %v527_v45 = vstv %s2144_s24  ;;  %s2208_s7 = sld [smem:[#allocation3 + $0xd]]  ;;  %s2234_s24 = sld [smem:[#allocation3 + $0x10]] }
 0x172   : > { %v977_v46 = vrot.slane %v976_v42, 1  ;;  %v1230_v58 = vrot.slane %v1229_v43, 1  ;;  %v658_v57 = vmul.f32 %v657_v44, %v1985_v40  ;;  %v787_v11 = vstv %s2186_s4  ;;  %s1464_s4 = sld [smem:[#allocation3 + $0x20]] }
 0x173   : > { %631 = vrot.lane.b32.xlu1 %v601_v41, %s1730_s18  ;;  %501 = vrot.lane.b32.xlu0 %v471_v39, %s1730_s18  ;;  %v395_v41 = vmul.f32 %v394_v27, %v1985_v40  ;;  %v529_v27 = vstv %s2217_s11  ;;  %s2374_s11 = sld [smem:[#allocation3 + $0x1]] }
 0x174   : > { %v978_v50 = vsel %vm2543_vm8, %v976_v42, %v977_v46  ;;  %v1231_v6 = vsel %vm2543_vm8, %v1229_v43, %v1230_v58  ;;  %v672_v46 = vmul.f32 %v671_v33, %v1935_v54  ;;  %v528_v58 = vmul.f32 %v527_v45, %v1985_v40 }
 0x175   : > { %v980_v53 = vadd.f32 %v978_v50, %v929_v48  ;;  %v1215_v55 = vpop.permute.xlu1 %1214  ;;  %v1236_v56 = vpop.permute.xlu0 %1235  ;;  %v1233_v18 = vadd.f32 %v1231_v6, %v1185_v10  ;;  %v1050_v50 = vstv %s2156_s28  ;;  %s1451_s28 = sld [smem:[#allocation3 + $0x13]] }
 0x176   : > { %v1216_v59 = vrot.slane %v1215_v55, 7  ;;  %v1237_v7 = vrot.slane %v1236_v56, 1 }
 0x177   : > { %1010 = vrot.lane.b32.xlu1 %v980_v53, %s1730_s18  ;;  %761 = vrot.lane.b32.xlu0 %v731_v52, %s1730_s18 }
 0x178   : > { %v1217_v63 = vsel %vm447_vm7, %v1216_v59, %v1215_v55  ;;  %v1238_v23 = vsel %vm2543_vm8, %v1236_v56, %v1237_v7 }
 0x179   : > { %v1219_v3 = vadd.f32 %v1217_v63, %v1177_v61  ;;  %v857_v4 = vpop.permute.xlu1 %856  ;;  %v583_v5 = vpop.permute.xlu0 %582  ;;  %v1240_v35 = vadd.f32 %v1238_v23, %v1189_v28  ;;  %v1036_v61 = vstv %s2164_s25  ;;  %v1051_v63 = vmul.f32 %v1050_v50, %v1935_v54  ;;  %s1463_s25 = sld [smem:[#allocation3 + $0x1f]] }
 0x17a   : > { %v858_v8 = vrot.slane %v857_v4, 1  ;;  %v584_v9 = vrot.slane %v583_v5, 1  ;;  %v1166_v23 = vstv %s2208_s7  ;;  %s2366_s7 = sld [smem:[#allocation3 + $0x5]] }
 0x17b   : > { %1249 = vrot.lane.b32.xlu1 %v1219_v3, %s1731_s8  ;;  %1140 = vrot.lane.b32.xlu0 %v1110_v2, %s1730_s18  ;;  %v1180_v3 = vstv %s2177_s30  ;;  %v1167_v34 = vmul.f32 %v1166_v23, %v1985_v40  ;;  %s1461_s30 = sld [smem:[#allocation3 + $0x1d]] }
 0x17c   : > { %v859_v14 = vsel %vm2543_vm8, %v857_v4, %v858_v8  ;;  %v585_v15 = vsel %vm2543_vm8, %v583_v5, %v584_v9  ;;  %v1037_v8 = vmul.f32 %v1036_v61, %v1985_v40  ;;  %v907_v9 = vmul.f32 %v906_v62, %v1985_v40 }
 0x17d   : > { %v861_v19 = vadd.f32 %v859_v14, %v810_v12  ;;  %v2160_v20 = vadd.f32 %v585_v15, %v542_v13  ;;  %v453_v21 = vpop.permute.xlu1 %452  ;;  %v962_v22 = vpop.permute.xlu0 %961  ;;  %v1181_v12 = vmul.f32 %v1180_v3, %v1935_v54  ;;  %v396_v14 = vstv %s2196_s5  ;;  %s1466_s5 = sld [smem:[#allocation3 + $0x22]] }
 0x17e   : > { %v454_v24 = vrot.slane %v453_v21, 1  ;;  %v963_v26 = vrot.slane %v962_v22, 1  ;;  %v663_v15 = vstv %s2198_s6  ;;  %s1434_s6 = sld [smem:[#allocation3 + $0x2]] }
 0x17f   : > { %891 = vrot.lane.b32.xlu1 %v861_v19, %s1730_s18  ;;  %1256 = vrot.lane.b32.xlu0 %v1233_v18, %s1731_s8  ;;  %v788_v19 = vmul.f32 %v787_v11, %v1985_v40  ;;  %v1168_v11 = vstv %s1452_s29  ;;  %s1735_s29 = smov 110  }
 0x180   : > { %v455_v31 = vsel %vm2543_vm8, %v453_v21, %v454_v24  ;;  %v964_v32 = vsel %vm2543_vm8, %v962_v22, %v963_v26  ;;  %v397_v24 = vmul.f32 %v396_v14, %v1985_v40  ;;  %v664_v26 = vmul.f32 %v663_v15, %v1985_v40 }
 0x181   : > { %v2179_v36 = vadd.f32 %v455_v31, %v410_v29  ;;  %v2181_v37 = vadd.f32 %v964_v32, %v921_v30  ;;  %v713_v38 = vpop.permute.xlu1 %712  ;;  %v843_v39 = vpop.permute.xlu0 %842  ;;  %v533_v23 = vstv %s1461_s30  ;;  %s1736_s30 = smov 114  }
 0x182   : > { %v714_v42 = vrot.slane %v713_v38, 1  ;;  %v844_v43 = vrot.slane %v843_v39, 1 }
 0x183   : > { %422 = vrot.lane.b32.xlu1 %v395_v41, %s1732_s22  ;;  %1270 = vrot.lane.b32.xlu0 %v1240_v35, %s1730_s18  ;;  %v908_v41 = vstv %s2232_s17  ;;  %s2380_s17 = sld [smem:[#allocation3 + $0x4]] }
 0x184   : > { %v715_v48 = vsel %vm2543_vm8, %v713_v38, %v714_v42  ;;  %v845_v49 = vsel %vm2543_vm8, %v843_v39, %v844_v43  ;;  %v530_v39 = vmul.f32 %v529_v27, %v1985_v40  ;;  %v659_v42 = vstv %s2234_s24  ;;  %s2383_s24 = sld [smem:[#allocation3 + $0x3]] }
 0x185   : > { %v2200_v52 = vadd.f32 %v715_v48, %v672_v46  ;;  %v2202_v53 = vadd.f32 %v845_v49, %v802_v47  ;;  %v1092_v55 = vpop.permute.xlu1 %1091  ;;  %v438_v56 = vpop.permute.xlu0 %437  ;;  %v909_v48 = vmul.f32 %v908_v41, %v1985_v40  ;;  %v660_v49 = vmul.f32 %v659_v42, %v1985_v40 }
 0x186   : > { %v1093_v59 = vrot.slane %v1092_v55, 1  ;;  %v439_v60 = vrot.slane %v438_v56, 1 }
 0x187   : > { %684 = vrot.lane.b32.xlu1 %v658_v57, %s1732_s22  ;;  %554 = vrot.lane.b32.xlu0 %v528_v58, %s1732_s22  ;;  %v1038_v58 = vstv %s1451_s28  ;;  %s2391_s28 = sld [smem:[#allocation3 + $0x6]] }
 0x188   : > { %v1094_v1 = vsel %vm2543_vm8, %v1092_v55, %v1093_v59  ;;  %v440_v2 = vsel %vm2543_vm8, %v438_v56, %v439_v60  ;;  %v1039_v62 = vmul.f32 %v1038_v58, %v1985_v40 }
 0x189   : > { %v2219_v4 = vadd.f32 %v1094_v1, %v1051_v63  ;;  %v2221_v5 = vadd.f32 %v440_v2, %v401_v0  ;;  %v1222_v6 = vpop.permute.xlu1 %1221  ;;  %v562_v7 = vpop.permute.xlu0 %561  ;;  %v789_v63 = vstv %s1449_s20  ;;  %v793_v1 = vstv %s1463_s25  ;;  %s1733_s20 = smov 115   ;;  %s1734_s25 = smov 113  }
 0x18a   : > { %v1223_v10 = vrot.slane %v1222_v6, 1  ;;  %v563_v54 = vrot.slane %v562_v7, 1 }
 0x18b   : > { %1063 = vrot.lane.b32.xlu1 %v1037_v8, %s1732_s22  ;;  %933 = vrot.lane.b32.xlu0 %v907_v9, %s1732_s22  ;;  %v790_v8 = vmul.f32 %v789_v63, %v1985_v40  ;;  %v794_v9 = vmul.f32 %v793_v1, %v1985_v40 }
 0x18c   : > { %v1224_v13 = vsel %vm2543_vm8, %v1222_v6, %v1223_v10  ;;  %v564_v35 = vsel %vm2543_vm8, %v562_v7, %v563_v54 }
 0x18d   : > { %v2236_v16 = vadd.f32 %v1224_v13, %v1181_v12  ;;  %v431_v17 = vpop.permute.xlu1 %430  ;;  %v699_v18 = vpop.permute.xlu0 %698  ;;  %v566_v43 = vadd.f32 %v564_v35, %v530_v39 }
 0x18e   : > { %v432_v21 = vrot.slane %v431_v17, 1  ;;  %v700_v22 = vrot.slane %v699_v18, 1 }
 0x18f   : > { %814 = vrot.lane.b32.xlu0 %v788_v19, %s1732_s22 }
 0x190   : > { %v433_v28 = vsel %vm2543_vm8, %v431_v17, %v432_v21  ;;  %v701_v29 = vsel %vm2543_vm8, %v699_v18, %v700_v22  ;;  %v1169_v17 = vmul.f32 %v1168_v11, %v1985_v40 }
 0x191   : > { %v435_v30 = vadd.f32 %v433_v28, %v397_v24  ;;  %v2246_v31 = vadd.f32 %v701_v29, %v664_v26  ;;  %v2248_v32 = vpop.permute.xlu1 %568  ;;  %v941_v33 = vpop.permute.xlu0 %940  ;;  %v534_v28 = vmul.f32 %v533_v23, %v1985_v40 }
 0x192   : > { %v942_v38 = vrot.slane %v941_v33, 1  ;;  %v570_v54 = vrot.slane %v2248_v32, 1 }
 0x193   : > { %473 = vrot.lane.b32.xlu1 %v435_v30, %s1731_s8  ;;  %1193 = vrot.lane.b32.xlu0 %v1167_v34, %s1732_s22 }
 0x194   : > { %v943_v46 = vsel %vm2543_vm8, %v941_v33, %v942_v38  ;;  %v571_v26 = vsel %vm2543_vm8, %v2248_v32, %v570_v54  ;;  %v912_v32 = vstv %s1464_s4  ;;  %s1737_s4 = smov 111  }
 0x195   : > { %v692_v44 = vpop.permute.xlu1 %691  ;;  %v2257_v45 = vpop.permute.xlu0 %1077  ;;  %v945_v51 = vadd.f32 %v943_v46, %v909_v48  ;;  %v573_v35 = vadd.f32 %v571_v26, %v534_v28  ;;  %v913_v48 = vmul.f32 %v912_v32, %v1985_v40  ;;  %v1172_v28 = vstv %s1466_s5 }
 0x196   : > { %v693_v47 = vrot.slane %v692_v44, 1 }
 0x197   : > { %603 = vrot.lane.b32.xlu0 %v566_v43, %s1731_s8 }
 0x198   : > { %v694_v50 = vsel %vm2543_vm8, %v692_v44, %v693_v47 }
 0x199   : > { %v696_v55 = vadd.f32 %v694_v50, %v660_v49  ;;  %v948_v56 = vpop.permute.xlu1 %947  ;;  %v822_v57 = vpop.permute.xlu0 %821 }
 0x19a   : > { %v823_v60 = vrot.slane %v822_v57, 1  ;;  %v949_v38 = vrot.slane %v948_v56, 1 }
 0x19b   : > { %733 = vrot.lane.b32.xlu1 %v696_v55, %s1731_s8  ;;  %982 = vrot.lane.b32.xlu0 %v945_v51, %s1731_s8 }
 0x19c   : > { %v824_v6 = vsel %vm2543_vm8, %v822_v57, %v823_v60  ;;  %v950_v46 = vsel %vm2543_vm8, %v948_v56, %v949_v38  ;;  %v1173_v38 = vmul.f32 %v1172_v28, %v1985_v40 }
 0x19d   : > { %v1071_v59 = vpop.permute.xlu1 %1070  ;;  %v826_v12 = vadd.f32 %v824_v6, %v790_v8  ;;  %v2280_v21 = vpop.permute.xlu0 %1207  ;;  %v952_v58 = vadd.f32 %v950_v46, %v913_v48 }
 0x19e   : > { %v1072_v61 = vrot.slane %v1071_v59, 1 }
 0x1a0   : > { %v1073_v0 = vsel %vm2543_vm8, %v1071_v59, %v1072_v61 }
 0x1a1   : > { %v1075_v2 = vadd.f32 %v1073_v0, %v1039_v62  ;;  %v829_v3 = vpop.permute.xlu1 %828 }
 0x1a2   : > { %v830_v7 = vrot.slane %v829_v3, 1 }
 0x1a3   : > { %1112 = vrot.lane.b32.xlu1 %v1075_v2, %s1731_s8 }
 0x1a4   : > { %v831_v10 = vsel %vm2543_vm8, %v829_v3, %v830_v7 }
 0x1a5   : > { %v2273_v13 = vadd.f32 %v831_v10, %v794_v9  ;;  %v1201_v14 = vpop.permute.xlu1 %1200 }
 0x1a6   : > { %v1202_v15 = vrot.slane %v1201_v14, 1 }
 0x1a7   : > { %863 = vrot.lane.b32.xlu1 %v826_v12, %s1731_s8 }
 0x1a8   : > { %v1203_v18 = vsel %vm2543_vm8, %v1201_v14, %v1202_v15 }
 0x1a9   : > { %v1205_v19 = vadd.f32 %v1203_v18, %v1169_v17 }
 0x1ab   : > { %1242 = vrot.lane.b32.xlu1 %v1205_v19, %s1731_s8  ;;  %s1465_s8 = sld [smem:[#allocation3 + $0x21]]  ;;  %v1209_v19 = vrot.slane %v2280_v21, 1 }
 0x1b1   : > { %v1042_v55 = vstv %s1465_s8  ;;  %s1738_s8 = smov 109  }
 0x1b2   : > { %v1043_v56 = vmul.f32 %v1042_v55, %v1985_v40 }
 0x1c9   : > { %v481_v22 = vpop.permute.xlu1 %480 }
 0x1ca   : > { %v482_v24 = vrot.slane %v481_v22, 1 }
 0x1cc   : > { %v483_v27 = vsel %vm447_vm7, %v481_v22, %v482_v24 }
 0x1cd   : > { %v485_v29 = vadd.f32 %v483_v27, %v2221_v5  ;;  %v611_v30 = vpop.permute.xlu1 %610  ;;  %v488_v33 = vpop.permute.xlu0 %487  ;;  %v1079_v5 = vrot.slane %v2257_v45, 1 }
 0x1ce   : > { %v612_v34 = vrot.slane %v611_v30, 1  ;;  %v489_v6 = vrot.slane %v488_v33, 1 }
 0x1cf   : > { %494 = vrot.lane.b32.xlu0 %v485_v29, %s1730_s18  ;;  %v1080_v59 = vsel %vm2543_vm8, %v2257_v45, %v1079_v5 }
 0x1d0   : > { %v613_v39 = vsel %vm447_vm7, %v611_v30, %v612_v34  ;;  %v490_v9 = vsel %vm447_vm7, %v488_v33, %v489_v6 }
 0x1d1   : > { %v615_v41 = vadd.f32 %v613_v39, %v573_v35  ;;  %v741_v42 = vpop.permute.xlu1 %740  ;;  %v2289_v43 = vpop.permute.xlu0 %617  ;;  %v492_v18 = vadd.f32 %v490_v9, %v2179_v36  ;;  %v1210_v36 = vsel %vm2543_vm8, %v2280_v21, %v1209_v19 }
 0x1d2   : > { %v742_v44 = vrot.slane %v741_v42, 1  ;;  %v1212_v46 = vadd.f32 %v1210_v36, %v1173_v38  ;;  %v2369_v36 = vld [vmem:[#allocation2] ss:$2 sm:$0x7]  ;;  %v655_v38 = vstv %s1434_s6  ;;  %s198_s6 = scalar_lea.vmem [#allocation8], %s1431_s23 }
 0x1d3   : > { %624 = vrot.lane.b32.xlu1 %v615_v41, %s1730_s18 }
 0x1d4   : > { %v743_v47 = vsel %vm447_vm7, %v741_v42, %v742_v44 }
 0x1d5   : > { %v745_v49 = vadd.f32 %v743_v47, %v2246_v31  ;;  %v990_v50 = vpop.permute.xlu1 %989  ;;  %v748_v51 = vpop.permute.xlu0 %747  ;;  %v1082_v31 = vadd.f32 %v1080_v59, %v1043_v56 }
 0x1d6   : > { %v991_v57 = vrot.slane %v990_v50, 1  ;;  %v749_v10 = vrot.slane %v748_v51, 1 }
 0x1d7   : > { %754 = vrot.lane.b32.xlu0 %v745_v49, %s1730_s18 }
 0x1d8   : > { %v992_v60 = vsel %vm447_vm7, %v990_v50, %v991_v57  ;;  %v750_v54 = vsel %vm447_vm7, %v748_v51, %v749_v10 }
 0x1d9   : > { %v994_v61 = vadd.f32 %v992_v60, %v952_v58  ;;  %v1120_v62 = vpop.permute.xlu1 %1119  ;;  %v2302_v63 = vpop.permute.xlu0 %996  ;;  %v752_v30 = vadd.f32 %v750_v54, %v2200_v52 }
 0x1da   : > { %v1121_v0 = vrot.slane %v1120_v62, 1  ;;  %v998_v21 = vrot.slane %v2302_v63, 1 }
 0x1db   : > { %1003 = vrot.lane.b32.xlu1 %v994_v61, %s1730_s18 }
 0x1dc   : > { %v1122_v1 = vsel %vm447_vm7, %v1120_v62, %v1121_v0  ;;  %v999_v56 = vsel %vm447_vm7, %v2302_v63, %v998_v21 }
 0x1dd   : > { %v1124_v2 = vadd.f32 %v1122_v1, %v1082_v31  ;;  %v1127_v3 = vpop.permute.xlu0 %1126 }
 0x1de   : > { %v1128_v22 = vrot.slane %v1127_v3, 1 }
 0x1df   : > { %1133 = vrot.lane.b32.xlu0 %v1124_v2, %s1730_s18 }
 0x1e0   : > { %v1129_v33 = vsel %vm447_vm7, %v1127_v3, %v1128_v22 }
 0x1e1   : > { %v878_v45 = vpop.permute.xlu1 %877  ;;  %v871_v7 = vpop.permute.xlu0 %870  ;;  %v1131_v47 = vadd.f32 %v1129_v33, %v2219_v4 }
 0x1e2   : > { %v872_v8 = vrot.slane %v871_v7, 1  ;;  %v879_v34 = vrot.slane %v878_v45, 1 }
 0x1e4   : > { %v873_v11 = vsel %vm447_vm7, %v871_v7, %v872_v8  ;;  %v880_v48 = vsel %vm447_vm7, %v878_v45, %v879_v34 }
 0x1e5   : > { %v875_v12 = vadd.f32 %v873_v11, %v2273_v13  ;;  %v632_v14 = vpop.permute.xlu1 %631  ;;  %v502_v15 = vpop.permute.xlu0 %501  ;;  %v619_v13 = vrot.slane %v2289_v43, 1  ;;  %v882_v60 = vadd.f32 %v880_v48, %v2202_v53 }
 0x1e6   : > { %v503_v17 = vrot.slane %v502_v15, 1  ;;  %v633_v32 = vrot.slane %v632_v14, 1 }
 0x1e7   : > { %884 = vrot.lane.b32.xlu0 %v875_v12, %s1730_s18  ;;  %v620_v52 = vsel %vm447_vm7, %v2289_v43, %v619_v13 }
 0x1e8   : > { %v504_v23 = vsel %vm258_vm5, %v502_v15, %v503_v17  ;;  %v634_v58 = vsel %vm258_vm5, %v632_v14, %v633_v32  ;;  %v622_v4 = vadd.f32 %v620_v52, %v2160_v20  ;;  %v1001_v20 = vadd.f32 %v999_v56, %v2181_v37 }
 0x1e9   : > { %v506_v24 = vadd.f32 %v504_v23, %v492_v18  ;;  %v1011_v26 = vpop.permute.xlu1 %1010  ;;  %v762_v27 = vpop.permute.xlu0 %761  ;;  %v656_v52 = vmul.f32 %v2369_v36, %v655_v38 }
 0x1ea   : > { %v763_v29 = vrot.slane %v762_v27, 1  ;;  %v1012_v59 = vrot.slane %v1011_v26, 1  ;;  %v636_v0 = vadd.f32 %v634_v58, %v622_v4 }
 0x1eb   : > { %508 = vrot.lane.b32.xlu1 %v506_v24, %s1732_s22 }
 0x1ec   : > { %v764_v35 = vsel %vm258_vm5, %v762_v27, %v763_v29  ;;  %v1013_v2 = vsel %vm258_vm5, %v1011_v26, %v1012_v59 }
 0x1ed   : > { %v766_v39 = vadd.f32 %v764_v35, %v752_v30  ;;  %v1250_v41 = vpop.permute.xlu1 %1249  ;;  %v1141_v42 = vpop.permute.xlu0 %1140  ;;  %v1015_v6 = vadd.f32 %v1013_v2, %v1001_v20 }
 0x1ee   : > { %v1251_v44 = vrot.slane %v1250_v41, 1  ;;  %v1142_v5 = vrot.slane %v1141_v42, 1 }
 0x1ef   : > { %768 = vrot.lane.b32.xlu1 %v766_v39, %s1732_s22 }
 0x1f0   : > { %v1252_v40 = vsel %vm447_vm7, %v1250_v41, %v1251_v44  ;;  %v1143_v49 = vsel %vm258_vm5, %v1141_v42, %v1142_v5 }
 0x1f1   : > { %v1254_v50 = vadd.f32 %v1252_v40, %v1212_v46  ;;  %v1145_v51 = vadd.f32 %v1143_v49, %v1131_v47  ;;  %v892_v55 = vpop.permute.xlu1 %891  ;;  %v1257_v57 = vpop.permute.xlu0 %1256  ;;  %v1034_v40 = vstv %s2366_s7  ;;  %s1340_s7 = sshll.u32 %s198_s6, 4  ;;  %s2494_s7 = int_to_ptr.vmem [resolvable:$true] %s1340_s7 }
 0x1f2   : > { %v893_v43 = vrot.slane %v892_v55, 1  ;;  %v1258_v62 = vrot.slane %v1257_v57, 1  ;;  %v1035_v56 = vmul.f32 %v2369_v36, %v1034_v40 }
 0x1f3   : > { %1263 = vrot.lane.b32.xlu0 %v1254_v50, %s1730_s18  ;;  %1147 = vrot.lane.b32.xlu1 %v1145_v51, %s1732_s22  ;;  %s292_s18 = sld [smem:[#allocation3]] }
 0x1f4   : > { %v894_v61 = vsel %vm258_vm5, %v892_v55, %v893_v43  ;;  %v1259_v53 = vsel %vm447_vm7, %v1257_v57, %v1258_v62 }
 0x1f5   : > { %v896_v31 = vadd.f32 %v894_v61, %v882_v60  ;;  %v1271_v1 = vpop.permute.xlu0 %1270  ;;  %v1261_v45 = vadd.f32 %v1259_v53, %v2236_v16  ;;  %v423_v8 = vpop.permute.xlu1 %422 }
 0x1f6   : > { %v1272_v3 = vrot.slane %v1271_v1, 1  ;;  %v424_v23 = vrot.slane %v423_v8, 1 }
 0x1f7   : > { %638 = vrot.lane.b32.xlu0 %v636_v0, %s1732_s22  ;;  %898 = vrot.lane.b32.xlu1 %v896_v31, %s1732_s22 }
 0x1f8   : > { %v1273_v63 = vsel %vm258_vm5, %v1271_v1, %v1272_v3  ;;  %v426_v29 = vsel %vm2543_vm8, %v423_v8, %v424_v23  ;;  %v525_v1 = vstv %s2374_s11 }
 0x1f9   : > { %v1275_v7 = vadd.f32 %v1273_v63, %v1261_v45  ;;  %v685_v9 = vpop.permute.xlu1 %684  ;;  %v2348_v10 = vpop.permute.xlu0 %554  ;;  %v392_v27 = vstv %s292_s18 }
 0x1fa   : > { %v686_v13 = vrot.slane %v685_v9, 1  ;;  %v393_v33 = vmul.f32 %v2369_v36, %v392_v27  ;;  %v556_v57 = vrot.slane %v2348_v10, 1 }
 0x1fb   : > { %1017 = vrot.lane.b32.xlu0 %v1015_v6, %s1732_s22 }
 0x1fc   : > { %v428_v42 = vadd.f32 %v426_v29, %v393_v33  ;;  %v687_v32 = vsel %vm2543_vm8, %v685_v9, %v686_v13  ;;  %v557_v53 = vsel %vm2543_vm8, %v2348_v10, %v556_v57  ;;  %v785_v10 = vstv %s2383_s24 }
 0x1fd   : > { %v1064_v37 = vpop.permute.xlu1 %1063  ;;  %v2350_v11 = vpop.permute.xlu0 %933  ;;  %v689_v55 = vadd.f32 %v687_v32, %v656_v52  ;;  %v1164_v32 = vstv %s2391_s28  ;;  %s1326_s28 = scalar_lea.sflag [#allocation5], %s1909_s26 }
 0x1fe   : > { %v1065_v44 = vrot.slane %v1064_v37, 1  ;;  %v935_v45 = vrot.slane %v2350_v11, 1 }
 0x1ff   : > { %1277 = vrot.lane.b32.xlu0 %v1275_v7, %s1732_s22 }
 0x200   : > { %v1066_v59 = vsel %vm2543_vm8, %v1064_v37, %v1065_v44  ;;  %v526_v37 = vmul.f32 %v2369_v36, %v525_v1  ;;  %v936_v38 = vsel %vm2543_vm8, %v2350_v11, %v935_v45 }
 0x201   : > { %v2352_v14 = vpop.permute.xlu0 %814  ;;  %v1068_v6 = vadd.f32 %v1066_v59, %v1035_v56  ;;  %v1165_v59 = vmul.f32 %v2369_v36, %v1164_v32 }
 0x202   : > { %v559_v13 = vadd.f32 %v557_v53, %v526_v37 }
 0x205   : > { %v474_v12 = vpop.permute.xlu1 %473  ;;  %v2354_v17 = vpop.permute.xlu0 %1193 }
 0x206   : > { %v475_v28 = vrot.slane %v474_v12, 1  ;;  %v1195_v33 = vrot.slane %v2354_v17, 1 }
 0x208   : > { %v476_v39 = vsel %vm447_vm7, %v474_v12, %v475_v28  ;;  %v904_v12 = vstv %s2380_s17  ;;  %v1196_v40 = vsel %vm2543_vm8, %v2354_v17, %v1195_v33 }
 0x209   : > { %v2356_v16 = vpop.permute.xlu0 %603  ;;  %v478_v47 = vadd.f32 %v476_v39, %v428_v42  ;;  %v905_v42 = vmul.f32 %v2369_v36, %v904_v12  ;;  %v390_v12 = vld [vmem:[%s2537_s1] sm:$0x3] }
 0x20a   : > { %v605_v2 = vrot.slane %v2356_v16, 1  ;;  %vm514_vm9 = vcmp.ge.s32.totalorder %v390_v12, 3  ;;  %vm515_vm10 = vcmp.lt.s32.totalorder %v390_v12, 19  ;;  %vm644_vm13 = vcmp.ge.s32.totalorder %v390_v12, 2 }
 0x20b   : > { %vm1023_vm14 = vcmp.ge.s32.totalorder %v390_v12, 4294967295  ;;  %vm1024_vm15 = vcmp.lt.s32.totalorder %v390_v12, 15  ;;  %vm645_vm0 = vcmp.lt.s32.totalorder %v390_v12, 18  ;;  %vm2448_vm2 = vmand %vm514_vm9, %vm515_vm10  ;;  %vm1154_vm3 = vcmp.lt.s32.totalorder %v390_v12, 14 }
 0x20c   : > { %v606_v27 = vsel %vm447_vm7, %v2356_v16, %v605_v2  ;;  %vm774_vm6 = vcmp.ge.s32.totalorder %v390_v12, 1  ;;  %vm2453_vm12 = vmand %vm1023_vm14, %vm1024_vm15  ;;  %vm1283_vm9 = vcmp.ge.s32.totalorder %v390_v12, 4294967293  ;;  %vm1284_vm10 = vcmp.lt.s32.totalorder %v390_v12, 13 }
 0x20d   : > { %v734_v15 = vpop.permute.xlu1 %733  ;;  %v2360_v54 = vpop.permute.xlu0 %982  ;;  %v608_v44 = vadd.f32 %v606_v27, %v559_v13  ;;  %v2557_v27 = vmov 0  ;;  %v2559_v13 = vmov 0  ;;  %vm2458_vm11 = vmand %vm644_vm13, %vm645_vm0  ;;  %vm2564_vm14 = vcmp.ge.s32.totalorder %v390_v12, 4294967294 }
 0x20e   : > { %v735_v41 = vrot.slane %v734_v15, 1  ;;  %v984_v28 = vrot.slane %v2360_v54, 1  ;;  %v2558_v27 = vsel %vm2448_vm2, 4294967295, %v2557_v27  ;;  %v2560_v13 = vsel %vm2453_vm12, 4294967295, %v2559_v13  ;;  %vm2464_vm15 = vmand %vm2564_vm14, %vm1154_vm3 }
 0x20f   : > { %vm2563_vm2 = vcmask 941056   ;;  %vm2569_vm13 = vnez %v2560_v13  ;;  %vm1290_vm0 = vcmask 891904  }
 0x210   : > { %v736_v49 = vsel %vm447_vm7, %v734_v15, %v735_v41  ;;  %v985_v52 = vsel %vm447_vm7, %v2360_v54, %v984_v28 }
 0x211   : > { %v738_v61 = vadd.f32 %v736_v49, %v689_v55 }
 0x215   : > { %v1113_v18 = vpop.permute.xlu1 %1112 }
 0x216   : > { %v1114_v50 = vrot.slane %v1113_v18, 1 }
 0x218   : > { %v1115_v3 = vsel %vm447_vm7, %v1113_v18, %v1114_v50 }
 0x219   : > { %v2358_v19 = vpop.permute.xlu1 %863  ;;  %v1117_v15 = vadd.f32 %v1115_v3, %v1068_v6 }
 0x21d   : > { %v2362_v22 = vpop.permute.xlu1 %1242 }
 0x21e   : > { %v1244_v11 = vrot.slane %v2362_v22, 1 }
 0x241   : > { %v495_v24 = vpop.permute.xlu0 %494 }
 0x242   : > { %v496_v30 = vrot.slane %v495_v24, 1 }
 0x244   : > { %v497_v5 = vsel %vm258_vm5, %v495_v24, %v496_v30  ;;  %v816_v30 = vrot.slane %v2352_v14, 1 }
 0x245   : > { %v2364_v26 = vpop.permute.xlu1 %624  ;;  %v499_v58 = vadd.f32 %v497_v5, %v478_v47  ;;  %v865_v47 = vrot.slane %v2358_v19, 1 }
 0x246   : > { %v626_v7 = vrot.slane %v2364_v26, 1 }
 0x247   : > { %v866_v17 = vsel %vm447_vm7, %v2358_v19, %v865_v47 }
 0x248   : > { %v627_v39 = vsel %vm258_vm5, %v2364_v26, %v626_v7  ;;  %v817_v26 = vsel %vm2543_vm8, %v2352_v14, %v816_v30 }
 0x249   : > { %v755_v34 = vpop.permute.xlu0 %754  ;;  %v629_v49 = vadd.f32 %v627_v39, %v608_v44 }
 0x24a   : > { %v756_v46 = vrot.slane %v755_v34, 1 }
 0x24c   : > { %v757_v43 = vsel %vm258_vm5, %v755_v34, %v756_v46 }
 0x24d   : > { %v2372_v35 = vpop.permute.xlu1 %1003  ;;  %v759_v63 = vadd.f32 %v757_v43, %v738_v61 }
 0x24e   : > { %v1005_v41 = vrot.slane %v2372_v35, 1 }
 0x251   : > { %v1134_v21 = vpop.permute.xlu0 %1133 }
 0x252   : > { %v1135_v4 = vrot.slane %v1134_v21, 1 }
 0x254   : > { %v1136_v8 = vsel %vm258_vm5, %v1134_v21, %v1135_v4 }
 0x255   : > { %v1138_v34 = vadd.f32 %v1136_v8, %v1117_v15 }
 0x259   : > { %v2393_v62 = vpop.permute.xlu0 %884 }
 0x25a   : > { %v886_v54 = vrot.slane %v2393_v62, 1 }
 0x25c   : > { %v887_v1 = vsel %vm258_vm5, %v2393_v62, %v886_v54 }
 0x25d   : > { %v509_v48 = vpop.permute.xlu1 %508 }
 0x25e   : > { %v510_v51 = vrot.slane %v509_v48, 1 }
 0x260   : > { %v511_v60 = vsel %vm2543_vm8, %v509_v48, %v510_v51  ;;  %v938_v48 = vadd.f32 %v936_v38, %v905_v42  ;;  %v1006_v51 = vsel %vm258_vm5, %v2372_v35, %v1005_v41 }
 0x261   : > { %v513_v0 = vadd.f32 %v511_v60, %v499_v58  ;;  %v769_v31 = vpop.permute.xlu1 %768  ;;  %v786_v58 = vmul.f32 %v2369_v36, %v785_v10  ;;  %v1245_v60 = vsel %vm447_vm7, %v2362_v22, %v1244_v11  ;;  %vm775_vm7 = vcmp.lt.s32.totalorder %v390_v12, 17 }
 0x262   : > { %v770_v20 = vrot.slane %v769_v31, 1  ;;  %v987_v14 = vadd.f32 %v985_v52, %v938_v48  ;;  %vm2468_vm12 = vmand %vm774_vm6, %vm775_vm7 }
 0x263   : > { %518 = vrot.lane.b32.xlu1 %v513_v0, %s1733_s20  ;;  %v819_v61 = vadd.f32 %v817_v26, %v786_v58  ;;  %v1198_v0 = vadd.f32 %v1196_v40, %v1165_v59  ;;  %s1654_s20 = scalar_lea.vmem %s2494_s7, 128 }
 0x264   : > { %v771_v9 = vsel %vm2543_vm8, %v769_v31, %v770_v20  ;;  %v1008_v31 = vadd.f32 %v1006_v51, %v987_v14  ;;  %p1655_p8 = scmp.ne.s32.totalorder %s2494_s7, %s1654_s20 }
 0x265   : > { %v773_v18 = vadd.f32 %v771_v9, %v759_v63  ;;  %v1148_v23 = vpop.permute.xlu1 %1147  ;;  %v1264_v24 = vpop.permute.xlu0 %1263  ;;  %v868_v3 = vadd.f32 %v866_v17, %v819_v61  ;;  %v1247_v20 = vadd.f32 %v1245_v60, %v1198_v0  ;;  %v1314_v60 = vsub.s32 0, %v1922_v25 }
 0x266   : > { %v1149_v29 = vrot.slane %v1148_v23, 1  ;;  %v1265_v55 = vrot.slane %v1264_v24, 1  ;;  %p1656_p11 = pnand %p1655_p8, %p2572_p9 }
 0x267   : > { %778 = vrot.lane.b32.xlu1 %v773_v18, %s1734_s25  ;;  %v889_v63 = vadd.f32 %v887_v1, %v868_v3 }
 0x268   : > { %v1150_v16 = vsel %vm2543_vm8, %v1148_v23, %v1149_v29  ;;  %v1266_v36 = vsel %vm258_vm5, %v1264_v24, %v1265_v55  ;;  %vm1030_vm5 = vcmask 908288   ;;  %p1657_p5 = pneg %p1656_p11 }
 0x269   : > { %v1152_v5 = vadd.f32 %v1150_v16, %v1138_v34  ;;  %v639_v46 = vpop.permute.xlu0 %638  ;;  %v899_v50 = vpop.permute.xlu1 %898  ;;  %v1268_v45 = vadd.f32 %v1266_v36, %v1247_v20 }
 0x26a   : > { %v640_v21 = vrot.slane %v639_v46, 1  ;;  %v900_v56 = vrot.slane %v899_v50, 1 }
 0x26b   : > { %1157 = vrot.lane.b32.xlu1 %v1152_v5, %s1735_s29 }
 0x26c   : > { %v641_v57 = vsel %vm2543_vm8, %v639_v46, %v640_v21  ;;  %v901_v22 = vsel %vm2543_vm8, %v899_v50, %v900_v56  ;;  %v1318_v56 = vsub.s32 1, %v1922_v25 }
 0x26d   : > { %v643_v43 = vadd.f32 %v641_v57, %v629_v49  ;;  %v1018_v4 = vpop.permute.xlu0 %1017  ;;  %v903_v8 = vadd.f32 %v901_v22, %v889_v63 }
 0x26e   : > { %v1019_v35 = vrot.slane %v1018_v4, 1 }
 0x26f   : > { %648 = vrot.lane.b32.xlu0 %v643_v43, %s1736_s30 }
 0x270   : > { %v1020_v2 = vsel %vm2543_vm8, %v1018_v4, %v1019_v35 }
 0x271   : > { %v1022_v19 = vadd.f32 %v1020_v2, %v1008_v31  ;;  %v1278_v53 = vpop.permute.xlu0 %1277  ;;  %v1320_v31 = vld [vmem:[%s1915_s27] sm:$0xff] }
 0x272   : > { %v1279_v6 = vrot.slane %v1278_v53, 1 }
 0x273   : > { %1027 = vrot.lane.b32.xlu0 %v1022_v19, %s1737_s4 }
 0x274   : > { %v1280_v7 = vsel %vm2543_vm8, %v1278_v53, %v1279_v6  ;;  %vm781_vm8 = vcmask 924672  }
 0x275   : > { %v1282_v9 = vadd.f32 %v1280_v7, %v1268_v45 }
 0x277   : > { %1296 = vrot.lane.b32.xlu0 %v903_v8, %s1732_s22  ;;  %1287 = vrot.lane.b32.xlu1 %v1282_v9, %s1738_s8  ;;  %s1536_s22 = sshll.u32 %s1781_s16, 7  ;;  %s1739_s16 = smov [#allocation8]  }
 0x278   : > { %s2492_s24 = scalar_lea.hbm %s2539_s3, %s1536_s22  ;;  %s1658_s23 = sshll.u32 %s1739_s16, 4  ;;  %s1659_s23 = int_to_ptr.vmem [resolvable:$false] %s1658_s23 }
 0x279   : > { %s1660_s27 = scalar_lea.vmem %s1659_s23, 256  ;;  %p1661_p1 = scmp.lt.s32.totalorder %s2494_s7, %s1659_s23 }
 0x27a   : > { %p1662_p2 = scmp.lt.s32.totalorder %s1660_s27, %s1654_s20 }
 0x27c   : > { %p1663_p12 = por %p1662_p2, %p1661_p1 }
 0x27e   : > { %p1664_p0 = pnand %p1663_p12, %p1657_p5 }
 0x2d5   : > { %v519_v62 = vpop.permute.xlu1 %518 }
 0x2d6   : > { %v520_v24 = vrot.slane %v519_v62, 1 }
 0x2d8   : > { %v522_v38 = vsel %vm2563_vm2, %v519_v62, %v520_v24  ;;  %vm2570_vm2 = vnez %v2558_v27 }
 0x2d9   : > { %v779_v37 = vpop.permute.xlu1 %778  ;;  %v524_v21 = vsel %vm2570_vm2, %v522_v38, 0.0 }
 0x2da   : > { %v780_v28 = vrot.slane %v779_v37, 1 }
 0x2dc   : > { %v782_v32 = vsel %vm781_vm8, %v779_v37, %v780_v28  ;;  %vm2571_vm8 = vcmask 916480  }
 0x2dd   : > { %v1158_v15 = vpop.permute.xlu1 %1157  ;;  %v784_v26 = vsel %vm2468_vm12, %v782_v32, 0.0 }
 0x2de   : > { %v1159_v10 = vrot.slane %v1158_v15, 1 }
 0x2e0   : > { %v1161_v41 = vsel %vm1160_vm4, %v1158_v15, %v1159_v10 }
 0x2e1   : > { %v649_v18 = vpop.permute.xlu0 %648  ;;  %v1163_v48 = vsel %vm2464_vm15, %v1161_v41, 0.0 }
 0x2e2   : > { %v650_v23 = vrot.slane %v649_v18, 1 }
 0x2e4   : > { %v652_v34 = vsel %vm651_vm1, %v649_v18, %v650_v23  ;;  %vm1285_vm1 = vmand %vm1283_vm9, %vm1284_vm10 }
 0x2e5   : > { %v1028_v29 = vpop.permute.xlu0 %1027  ;;  %v654_v52 = vsel %vm2458_vm11, %v652_v34, 0.0 }
 0x2e6   : > { %v1029_v30 = vrot.slane %v1028_v29, 1  ;;  %v1294_v51 = vadd.f32 %v654_v52, %v524_v21 }
 0x2e8   : > { %v1031_v16 = vsel %vm1030_vm5, %v1028_v29, %v1029_v30 }
 0x2e9   : > { %v1033_v44 = vsel %vm2569_vm13, %v1031_v16, 0.0  ;;  %v1288_v5 = vpop.permute.xlu1 %1287  ;;  %v1297_v46 = vpop.permute.xlu0 %1296 }
 0x2ea   : > { %v1289_v47 = vrot.slane %v1288_v5, 1  ;;  %v1298_v11 = vrot.slane %v1297_v46, 1  ;;  %v1302_v40 = vadd.f32 %v1163_v48, %v1033_v44 }
 0x2ec   : > { %v1291_v49 = vsel %vm1290_vm0, %v1288_v5, %v1289_v47  ;;  %v1299_v50 = vsel %vm2571_vm8, %v1297_v46, %v1298_v11 }
 0x2ed   : > { %v1293_v54 = vsel %vm1285_vm1, %v1291_v49, 0.0  ;;  %v1301_v55 = vadd.f32 %v1299_v50, %v784_v26 }
 0x2ee   : > { %v1304_v57 = vadd.f32 %v1302_v40, %v1293_v54 }
 0x2ef   : > { %v1303_v58 = vadd.f32 %v1301_v55, %v1294_v51 }
 0x2f1   : > { %v1305_v59 = vadd.f32 %v1304_v57, %v1303_v58 }
 0x2f3   : > { %v1306_v14 = vsub.f32 0.0, %v1305_v59 }
 0x2f5   : > { %v1307_v43 = vmul.f32 1.442695, %v1306_v14 }
 0x2f7   : > { %1606 = vpow2.f32 %v1307_v43 }
 0x301   : > { %v1607_v4 = vpop.eup %1606 }
 0x302   : > { %v1309_v17 = vadd.f32 1.0, %v1607_v4 }
 0x304   : > { %1608 = vrcp.f32 %v1309_v17 }
 0x30e   : > { %v1609_v35 = vpop.eup %1608 }
 0x30f   : > { %v1315_v61 = vrot.slane %v1609_v35, %v1314_v60  ;;  %v1319_v0 = vrot.slane %v1609_v35, %v1318_v56 }
 0x311   : > { %v1321_v1 = vcombine.low %v1315_v61, %v1319_v0 }
 0x313   : > { %v1323_v36 = vmul.f32 %v1321_v1, %v1320_v31 }
 0x315   : > { %1324 = vst [vmem:[%s198_s6] sm:$0xff] %v1323_v36 }
 0x316   : > { %1667 = shalt.err (!%p1664_p0)
}
 0x317   : > { %s1668_s26 = scalar_lea.hbm %s2492_s24, 128  ;;  %s1672_s30 = scalar_lea.hbm %s2539_s3, 256 }
 0x318   : > { %p1669_p3 = scmp.ne.s32.totalorder %s2492_s24, %s1668_s26  ;;  %p1673_p6 = scmp.lt.u32.totalorder %s2492_s24, %s2539_s3 }
 0x319   : > { %p1674_p13 = scmp.lt.u32.totalorder %s1672_s30, %s1668_s26  ;;  %p1676_p8 = scmp.lt.u32.totalorder %s1668_s26, %s2492_s24 }
 0x31a   : > { %p1670_p7 = pnand %p1669_p3, %p2572_p9 }
 0x31b   : > { %p1675_p4 = por %p1674_p13, %p1673_p6 }
 0x31c   : > { %p1671_p10 = pneg %p1670_p7 }
 0x31d   : > { %p1677_p11 = por %p1676_p8, %p1675_p4 }
 0x31f   : > { %p1678_p5 = pnand %p1677_p11, %p1671_p10 }
 0x321   : > { %1681 = shalt.err (!%p1678_p5)
}
 0x322   : > { %1543 = dma.vmem_to_hbm [thread:$0]  (%p2572_p9), %s2494_s7, 128, %s2492_s24, %s1326_s28  }
 0x323 PF: > { %s1352_s5 = sand.u32 1, %s1712_s12   ;;  %p2573_p1 = scmp.ne.s32.totalorder %s2545_s19, 0 }
 0x324   : > { %p2574_p2 = scmp.ge.s32.totalorder %s1724_s15, 2  ;;  %s1353_s18 = scalar_lea.sflag [#allocation5], %s1352_s5 }
 0x326   : > { %p1554_p12 = pnand %p2574_p2, %p2573_p1 }
 0x328   : > { %1707 = dma.done.wait (!%p1554_p12), %s1353_s18, 128  }
 0x329   : > { %1709 = vsyncadd (!%p1554_p12), %s1353_s18, 4294967168  ;;  %p17_p0 = scmp.ge.s32.totalorder %s1806_s21, 4   ;;  %s2575_s12 = smov %s1716_s13 }
 0x32a   : > { %s2576_s13 = smov %s1720_s14  ;;  %s2577_s14 = smov %s1846_s9 }
 0x32b   : > { %s2578_s15 = smov %s1806_s21  ;;  %19 = sbr.rel (!%p17_p0) target bundleno = 6 (0x6), region = 83 }
 0x332   :  { %1358 = vsyncpa [#allocation4], 1 }
 0x333   :  { %1360 = vsyncpa [#allocation4 + $0x1], 1 }
 0x334   :  { %1361 = vsyncpa [#allocation5], 1 }
 0x335   :  { %1363 = vsyncpa [#allocation5 + $0x1], 1 }
 0x336   :  { %1364 = vsyncpa [#allocation6], 1 }
 0x337   :  { %1366 = vsyncpa [#allocation6 + $0x1], 1 }

</bundles_post_ra>
